<compile_context>
chip_gen: v7x
topology: tpu7x:2x2x1
jax: 0.10.0
libtpu: 0.0.40
codegen_flags: <defaults>
</compile_context>

<pallas_src>
import functools

import jax
import jax.numpy as jnp
from jax.experimental import pallas as pl
from jax.experimental.pallas import tpu as pltpu

BN_EPS = 1e-5
_HALO_PAD = 128  # lane-aligned halo so every scratch store stays aligned
_TAPS = tuple((dh, dw) for dh in (-1, 0, 1) for dw in (-1, 0, 1))


# ----------------------------------------------------------------------------
# Fused kernel: expand 1x1 -> depthwise 3x3 -> project 1x1 (+ residual)
# Layout inside the kernel: activations are (channels, H*W), channel-major.
# ----------------------------------------------------------------------------
def _make_fused_kernel(H, W, use_expand, use_res):
    HW = H * W
    PAD = _HALO_PAD

    def kernel(*refs):
        if use_expand:
            (x_ref, mask_ref, w_e_ref, se_ref, be_ref,
             w_dw_ref, sd_ref, bd_ref, w_p_ref, sp_ref, bp_ref,
             o_ref, hbuf) = refs
        else:
            (x_ref, mask_ref,
             w_dw_ref, sd_ref, bd_ref, w_p_ref, sp_ref, bp_ref,
             o_ref, hbuf) = refs

        hidden = w_dw_ref.shape[0]
        x = x_ref[0]                                    # (Cin, H*W)

        # ---- stage 1: 1x1 expansion conv + BN + ReLU6 (lane-dense matmul) ---
        if use_expand:
            h = jnp.dot(w_e_ref[...], x, preferred_element_type=jnp.float32)
            h = jnp.clip(h * se_ref[...] + be_ref[...], 0.0, 6.0)
        else:
            h = x

        # ---- stage 2: 3x3 depthwise conv (pad=1, stride=1), flattened H*W --
        # Park the hidden activation in a lane-padded VMEM scratch; each tap is
        # a static-offset slice of that Ref times a precomputed border mask.
        zeros_pad = jnp.zeros((hidden, PAD), jnp.float32)
        hbuf[:, 0:PAD] = zeros_pad                      # keep halos NaN-free
        hbuf[:, PAD + HW:PAD + HW + PAD] = zeros_pad
        hbuf[:, PAD:PAD + HW] = h

        acc = jnp.zeros((hidden, HW), jnp.float32)
        for idx, (dh, dw) in enumerate(_TAPS):
            s = dh * W + dw
            src = hbuf[:, PAD + s:PAD + s + HW]         # (hidden, H*W)
            if s != 0:
                src = src * mask_ref[idx:idx + 1, :]    # zero out-of-image taps
            acc = acc + w_dw_ref[:, idx:idx + 1] * src
        h = jnp.clip(acc * sd_ref[...] + bd_ref[...], 0.0, 6.0)

        # ---- stage 3: 1x1 projection conv + BN + ReLU6 (+ residual) ---------
        y = jnp.dot(w_p_ref[...], h, preferred_element_type=jnp.float32)
        y = jnp.clip(y * sp_ref[...] + bp_ref[...], 0.0, 6.0)
        if use_res:
            y = y + x
        o_ref[0] = y.astype(o_ref.dtype)

    return kernel


def _full_spec(shape):
    zeros = (0,) * len(shape)
    return pl.BlockSpec(shape, lambda n, _z=zeros: _z)


def _border_masks(H, W):
    """(9, H*W) float32 masks: 1 where the 3x3 tap lands inside the image."""
    r = jnp.arange(H)
    c = jnp.arange(W)
    masks = []
    for dh, dw in _TAPS:
        rv = (r + dh >= 0) & (r + dh < H)
        cv = (c + dw >= 0) & (c + dw < W)
        masks.append((rv[:, None] & cv[None, :]).reshape(H * W))
    return jnp.stack(masks).astype(jnp.float32)


# ----------------------------------------------------------------------------
# Inverted_Block forward
# ----------------------------------------------------------------------------
@functools.partial(jax.jit, static_argnames=("expand_ratio", "stride"))
def inverted_block_forward(x_nchw, params, *, expand_ratio, stride):
    assert stride in (1, 2)
    N, Cin, H, W = x_nchw.shape
    HW = H * W
    hidden = params["w_dw"].shape[0]
    Cout = params["w_proj"].shape[0]
    use_expand = expand_ratio != 1
    use_res = (stride == 1) and (Cin == Cout)
    # NOTE: reference PyTorch depthwise_conv() hard-codes stride=1 (faithful).

    x = x_nchw.reshape(N, Cin, HW)          # free reshape: channel-major, HW on lanes
    masks = _border_masks(H, W)

    def col(v):                             # (C,) -> (C, 1) column vector
        return v.reshape(-1, 1)

    args = [x, masks]
    in_specs = [
        pl.BlockSpec((1, Cin, HW), lambda n: (n, 0, 0)),
        _full_spec((9, HW)),
    ]
    if use_expand:
        se, be = params["bn_expand"]
        args += [params["w_expand"], col(se), col(be)]
        in_specs += [_full_spec((hidden, Cin)),
                     _full_spec((hidden, 1)), _full_spec((hidden, 1))]
    sd, bd = params["bn_dw"]
    sp, bp = params["bn_proj"]
    args += [params["w_dw"], col(sd), col(bd),
             params["w_proj"], col(sp), col(bp)]
    in_specs += [_full_spec((hidden, 9)),
                 _full_spec((hidden, 1)), _full_spec((hidden, 1)),
                 _full_spec((Cout, hidden)),
                 _full_spec((Cout, 1)), _full_spec((Cout, 1))]

    kernel = _make_fused_kernel(H, W, use_expand, use_res)

    y = pl.pallas_call(
        kernel,
        out_shape=jax.ShapeDtypeStruct((N, Cout, HW), jnp.float32),
        grid=(N,),
        in_specs=in_specs,
        out_specs=pl.BlockSpec((1, Cout, HW), lambda n: (n, 0, 0)),
        scratch_shapes=[pltpu.VMEM((hidden, HW + 2 * _HALO_PAD), jnp.float32)],
        compiler_params=pltpu.CompilerParams(
            dimension_semantics=("parallel",)),
    )(*args)
    return y.reshape(N, Cout, H, W)


# ----------------------------------------------------------------------------
# Parameter construction (deterministic, inference-mode BN folded)
# ----------------------------------------------------------------------------
def _fold_bn(gamma, beta, mean, var):
    scale = gamma / jnp.sqrt(var + BN_EPS)
    shift = beta - mean * scale
    return scale, shift


def make_params(key, in_channels, out_channels, expand_ratio):
    hidden = in_channels * expand_ratio
    keys = jax.random.split(key, 12)
    params = {}

    if expand_ratio != 1:
        params["w_expand"] = 0.2 * jax.random.normal(
            keys[0], (hidden, in_channels), jnp.float32)        # (out, in) like Conv2d
        params["bn_expand"] = _fold_bn(
            1.0 + 0.1 * jax.random.normal(keys[1], (hidden,), jnp.float32),
            0.05 * jax.random.normal(keys[2], (hidden,), jnp.float32),
            0.05 * jax.random.normal(keys[3], (hidden,), jnp.float32),
            1.0 + 0.1 * jnp.abs(jax.random.normal(keys[4], (hidden,), jnp.float32)),
        )

    params["w_dw"] = 0.2 * jax.random.normal(keys[5], (hidden, 9), jnp.float32)
    params["bn_dw"] = _fold_bn(
        1.0 + 0.1 * jax.random.normal(keys[6], (hidden,), jnp.float32),
        0.05 * jax.random.normal(keys[7], (hidden,), jnp.float32),
        0.05 * jax.random.normal(keys[8], (hidden,), jnp.float32),
        1.0 + 0.1 * jnp.abs(jax.random.normal(keys[9], (hidden,), jnp.float32)),
    )

    params["w_proj"] = 0.2 * jax.random.normal(
        keys[10], (out_channels, hidden), jnp.float32)          # (out, in)
    bn_keys = jax.random.split(keys[11], 4)
    params["bn_proj"] = _fold_bn(
        1.0 + 0.1 * jax.random.normal(bn_keys[0], (out_channels,), jnp.float32),
        0.05 * jax.random.normal(bn_keys[1], (out_channels,), jnp.float32),
        0.05 * jax.random.normal(bn_keys[2], (out_channels,), jnp.float32),
        1.0 + 0.1 * jnp.abs(jax.random.normal(bn_keys[3], (out_channels,), jnp.float32)),
    )
    return params


# ----------------------------------------------------------------------------
# Pure-JAX reference (independent of the Pallas kernel) for a sanity check.
# ----------------------------------------------------------------------------
def reference_forward(x_nchw, params, *, expand_ratio, stride):
    N, Cin, H, W = x_nchw.shape
    Cout = params["w_proj"].shape[0]
    use_res = (stride == 1) and (Cin == Cout)

    h = x_nchw
    if expand_ratio != 1:
        s, b = params["bn_expand"]
        h = jnp.einsum("oc,nchw->nohw", params["w_expand"], h)
        h = jnp.clip(h * s[None, :, None, None] + b[None, :, None, None], 0.0, 6.0)

    hidden = h.shape[1]
    hp = jnp.pad(h, ((0, 0), (0, 0), (1, 1), (1, 1)))
    wd = params["w_dw"].reshape(hidden, 3, 3)
    acc = jnp.zeros_like(h)
    for kh in range(3):
        for kw in range(3):
            acc = acc + hp[:, :, kh:kh + H, kw:kw + W] * wd[:, kh, kw][None, :, None, None]
    s, b = params["bn_dw"]
    h = jnp.clip(acc * s[None, :, None, None] + b[None, :, None, None], 0.0, 6.0)

    s, b = params["bn_proj"]
    y = jnp.einsum("oc,nchw->nohw", params["w_proj"], h)
    y = jnp.clip(y * s[None, :, None, None] + b[None, :, None, None], 0.0, 6.0)
    if use_res:
        y = y + x_nchw
    return y


if __name__ == "__main__":
    key = jax.random.PRNGKey(0)
    k_x, k_p = jax.random.split(key)

    N, Cin, H, W = 2, 4, 16, 16
    expand_ratio, out_channels, stride = 6, 4, 1   # residual path active

    x = jax.random.normal(k_x, (N, Cin, H, W), jnp.float32)
    params = make_params(k_p, Cin, out_channels, expand_ratio)

    out = inverted_block_forward(x, params, expand_ratio=expand_ratio, stride=stride)
    out = jax.block_until_ready(out)

    ref = reference_forward(x, params, expand_ratio=expand_ratio, stride=stride)
    assert out.shape == (N, out_channels, H, W)
    assert jnp.allclose(out, ref, atol=5e-4, rtol=5e-4), float(jnp.max(jnp.abs(out - ref)))

    print("KERNEL_OK")
</pallas_src>

<mosaic_0001>
module attributes {stable_mosaic.version = 11 : i64} {
  func.func @kernel(%arg0: i32, %arg1: memref<1x4x256xf32, #tpu.memory_space<vmem>>, %arg2: memref<9x256xf32, #tpu.memory_space<vmem>>, %arg3: memref<24x4xf32, #tpu.memory_space<vmem>>, %arg4: memref<24x1xf32, #tpu.memory_space<vmem>>, %arg5: memref<24x1xf32, #tpu.memory_space<vmem>>, %arg6: memref<24x9xf32, #tpu.memory_space<vmem>>, %arg7: memref<24x1xf32, #tpu.memory_space<vmem>>, %arg8: memref<24x1xf32, #tpu.memory_space<vmem>>, %arg9: memref<4x24xf32, #tpu.memory_space<vmem>>, %arg10: memref<4x1xf32, #tpu.memory_space<vmem>>, %arg11: memref<4x1xf32, #tpu.memory_space<vmem>>, %arg12: memref<1x4x256xf32, #tpu.memory_space<vmem>>, %arg13: memref<24x512xf32, #tpu.memory_space<vmem>>) attributes {dimension_semantics = [#tpu.dimension_semantics<parallel>], iteration_bounds = array<i64: 2>, scalar_prefetch = 0 : i64, scratch_operands = 1 : i64, tpu.core_type = #tpu.core_type<tc>, window_params = [{transform_indices = @transform_0, window_bounds = array<i64: 1, 4, 256>}, {pipeline_mode = #tpu.pipeline_mode<synchronous>, transform_indices = @transform_1, window_bounds = array<i64: 9, 256>}, {pipeline_mode = #tpu.pipeline_mode<synchronous>, transform_indices = @transform_2, window_bounds = array<i64: 24, 4>}, {pipeline_mode = #tpu.pipeline_mode<synchronous>, transform_indices = @transform_3, window_bounds = array<i64: 24, 1>}, {pipeline_mode = #tpu.pipeline_mode<synchronous>, transform_indices = @transform_4, window_bounds = array<i64: 24, 1>}, {pipeline_mode = #tpu.pipeline_mode<synchronous>, transform_indices = @transform_5, window_bounds = array<i64: 24, 9>}, {pipeline_mode = #tpu.pipeline_mode<synchronous>, transform_indices = @transform_6, window_bounds = array<i64: 24, 1>}, {pipeline_mode = #tpu.pipeline_mode<synchronous>, transform_indices = @transform_7, window_bounds = array<i64: 24, 1>}, {pipeline_mode = #tpu.pipeline_mode<synchronous>, transform_indices = @transform_8, window_bounds = array<i64: 4, 24>}, {pipeline_mode = #tpu.pipeline_mode<synchronous>, transform_indices = @transform_9, window_bounds = array<i64: 4, 1>}, {pipeline_mode = #tpu.pipeline_mode<synchronous>, transform_indices = @transform_10, window_bounds = array<i64: 4, 1>}, {transform_indices = @transform_11, window_bounds = array<i64: 1, 4, 256>}]} {
    %c0 = arith.constant 0 : index
    %c0_0 = arith.constant 0 : index
    %c0_1 = arith.constant 0 : index
    %0 = vector.load %arg1[%c0, %c0_0, %c0_1] : memref<1x4x256xf32, #tpu.memory_space<vmem>>, vector<1x4x256xf32>
    %1 = vector.shape_cast %0 : vector<1x4x256xf32> to vector<4x256xf32>
    %c0_2 = arith.constant 0 : index
    %c0_3 = arith.constant 0 : index
    %2 = vector.load %arg3[%c0_2, %c0_3] : memref<24x4xf32, #tpu.memory_space<vmem>>, vector<24x4xf32>
    %cst = arith.constant dense<0.000000e+00> : vector<24x256xf32>
    %3 = tpu.matmul %2, %1, %cst {dimension_numbers = #tpu.dot_dimension_numbers<[1], [0], [0], [1], [0, 0, 1, 1], [], []>} : vector<24x4xf32>, vector<4x256xf32>, vector<24x256xf32> -> vector<24x256xf32>
    %c0_4 = arith.constant 0 : index
    %c0_5 = arith.constant 0 : index
    %4 = vector.load %arg4[%c0_4, %c0_5] : memref<24x1xf32, #tpu.memory_space<vmem>>, vector<24x1xf32>
    %5 = vector.broadcast %4 : vector<24x1xf32> to vector<24x256xf32>
    %6 = arith.mulf %3, %5 : vector<24x256xf32>
    %c0_6 = arith.constant 0 : index
    %c0_7 = arith.constant 0 : index
    %7 = vector.load %arg5[%c0_6, %c0_7] : memref<24x1xf32, #tpu.memory_space<vmem>>, vector<24x1xf32>
    %8 = vector.broadcast %7 : vector<24x1xf32> to vector<24x256xf32>
    %9 = arith.addf %6, %8 : vector<24x256xf32>
    %cst_8 = arith.constant 0.000000e+00 : f32
    %cst_9 = arith.constant 6.000000e+00 : f32
    %10 = vector.broadcast %cst_8 : f32 to vector<24x256xf32>
    %11 = arith.maximumf %10, %9 : vector<24x256xf32>
    %12 = vector.broadcast %cst_9 : f32 to vector<24x256xf32>
    %13 = arith.minimumf %12, %11 : vector<24x256xf32>
    %cst_10 = arith.constant 0.000000e+00 : f32
    %14 = vector.broadcast %cst_10 : f32 to vector<24x128xf32>
    %c0_11 = arith.constant 0 : index
    %c0_12 = arith.constant 0 : index
    %15 = vector.load %arg13[%c0_11, %c0_12] : memref<24x512xf32, #tpu.memory_space<vmem>>, vector<24x128xf32>
    tpu.vector_store %arg13[%c0_11, %c0_12], %14 {strides = array<i32>} : memref<24x512xf32, #tpu.memory_space<vmem>>, vector<24x128xf32>,
    %c0_13 = arith.constant 0 : index
    %c384 = arith.constant 384 : index
    %16 = vector.load %arg13[%c0_13, %c384] : memref<24x512xf32, #tpu.memory_space<vmem>>, vector<24x128xf32>
    tpu.vector_store %arg13[%c0_13, %c384], %14 {strides = array<i32>} : memref<24x512xf32, #tpu.memory_space<vmem>>, vector<24x128xf32>,
    %c0_14 = arith.constant 0 : index
    %c128 = arith.constant 128 : index
    %17 = vector.load %arg13[%c0_14, %c128] : memref<24x512xf32, #tpu.memory_space<vmem>>, vector<24x256xf32>
    tpu.vector_store %arg13[%c0_14, %c128], %13 {strides = array<i32>} : memref<24x512xf32, #tpu.memory_space<vmem>>, vector<24x256xf32>,
    %cst_15 = arith.constant 0.000000e+00 : f32
    %18 = vector.broadcast %cst_15 : f32 to vector<24x256xf32>
    %c0_16 = arith.constant 0 : index
    %c111 = arith.constant 111 : index
    %19 = vector.load %arg13[%c0_16, %c111] : memref<24x512xf32, #tpu.memory_space<vmem>>, vector<24x256xf32>
    %c0_17 = arith.constant 0 : index
    %c0_18 = arith.constant 0 : index
    %20 = vector.load %arg2[%c0_17, %c0_18] : memref<9x256xf32, #tpu.memory_space<vmem>>, vector<1x256xf32>
    %21 = vector.broadcast %20 : vector<1x256xf32> to vector<24x256xf32>
    %22 = arith.mulf %19, %21 : vector<24x256xf32>
    %c0_19 = arith.constant 0 : index
    %c0_20 = arith.constant 0 : index
    %23 = vector.load %arg6[%c0_19, %c0_20] : memref<24x9xf32, #tpu.memory_space<vmem>>, vector<24x1xf32>
    %24 = vector.broadcast %23 : vector<24x1xf32> to vector<24x256xf32>
    %25 = arith.mulf %24, %22 : vector<24x256xf32>
    %26 = arith.addf %18, %25 : vector<24x256xf32>
    %c0_21 = arith.constant 0 : index
    %c112 = arith.constant 112 : index
    %27 = vector.load %arg13[%c0_21, %c112] : memref<24x512xf32, #tpu.memory_space<vmem>>, vector<24x256xf32>
    %c1 = arith.constant 1 : index
    %c0_22 = arith.constant 0 : index
    %28 = vector.load %arg2[%c1, %c0_22] : memref<9x256xf32, #tpu.memory_space<vmem>>, vector<1x256xf32>
    %29 = vector.broadcast %28 : vector<1x256xf32> to vector<24x256xf32>
    %30 = arith.mulf %27, %29 : vector<24x256xf32>
    %c0_23 = arith.constant 0 : index
    %c1_24 = arith.constant 1 : index
    %31 = vector.load %arg6[%c0_23, %c1_24] : memref<24x9xf32, #tpu.memory_space<vmem>>, vector<24x1xf32>
    %32 = vector.broadcast %31 : vector<24x1xf32> to vector<24x256xf32>
    %33 = arith.mulf %32, %30 : vector<24x256xf32>
    %34 = arith.addf %26, %33 : vector<24x256xf32>
    %c0_25 = arith.constant 0 : index
    %c113 = arith.constant 113 : index
    %35 = vector.load %arg13[%c0_25, %c113] : memref<24x512xf32, #tpu.memory_space<vmem>>, vector<24x256xf32>
    %c2 = arith.constant 2 : index
    %c0_26 = arith.constant 0 : index
    %36 = vector.load %arg2[%c2, %c0_26] : memref<9x256xf32, #tpu.memory_space<vmem>>, vector<1x256xf32>
    %37 = vector.broadcast %36 : vector<1x256xf32> to vector<24x256xf32>
    %38 = arith.mulf %35, %37 : vector<24x256xf32>
    %c0_27 = arith.constant 0 : index
    %c2_28 = arith.constant 2 : index
    %39 = vector.load %arg6[%c0_27, %c2_28] : memref<24x9xf32, #tpu.memory_space<vmem>>, vector<24x1xf32>
    %40 = vector.broadcast %39 : vector<24x1xf32> to vector<24x256xf32>
    %41 = arith.mulf %40, %38 : vector<24x256xf32>
    %42 = arith.addf %34, %41 : vector<24x256xf32>
    %c0_29 = arith.constant 0 : index
    %c127 = arith.constant 127 : index
    %43 = vector.load %arg13[%c0_29, %c127] : memref<24x512xf32, #tpu.memory_space<vmem>>, vector<24x256xf32>
    %c3 = arith.constant 3 : index
    %c0_30 = arith.constant 0 : index
    %44 = vector.load %arg2[%c3, %c0_30] : memref<9x256xf32, #tpu.memory_space<vmem>>, vector<1x256xf32>
    %45 = vector.broadcast %44 : vector<1x256xf32> to vector<24x256xf32>
    %46 = arith.mulf %43, %45 : vector<24x256xf32>
    %c0_31 = arith.constant 0 : index
    %c3_32 = arith.constant 3 : index
    %47 = vector.load %arg6[%c0_31, %c3_32] : memref<24x9xf32, #tpu.memory_space<vmem>>, vector<24x1xf32>
    %48 = vector.broadcast %47 : vector<24x1xf32> to vector<24x256xf32>
    %49 = arith.mulf %48, %46 : vector<24x256xf32>
    %50 = arith.addf %42, %49 : vector<24x256xf32>
    %c0_33 = arith.constant 0 : index
    %c128_34 = arith.constant 128 : index
    %51 = vector.load %arg13[%c0_33, %c128_34] : memref<24x512xf32, #tpu.memory_space<vmem>>, vector<24x256xf32>
    %c0_35 = arith.constant 0 : index
    %c4 = arith.constant 4 : index
    %52 = vector.load %arg6[%c0_35, %c4] : memref<24x9xf32, #tpu.memory_space<vmem>>, vector<24x1xf32>
    %53 = vector.broadcast %52 : vector<24x1xf32> to vector<24x256xf32>
    %54 = arith.mulf %53, %51 : vector<24x256xf32>
    %55 = arith.addf %50, %54 : vector<24x256xf32>
    %c0_36 = arith.constant 0 : index
    %c129 = arith.constant 129 : index
    %56 = vector.load %arg13[%c0_36, %c129] : memref<24x512xf32, #tpu.memory_space<vmem>>, vector<24x256xf32>
    %c5 = arith.constant 5 : index
    %c0_37 = arith.constant 0 : index
    %57 = vector.load %arg2[%c5, %c0_37] : memref<9x256xf32, #tpu.memory_space<vmem>>, vector<1x256xf32>
    %58 = vector.broadcast %57 : vector<1x256xf32> to vector<24x256xf32>
    %59 = arith.mulf %56, %58 : vector<24x256xf32>
    %c0_38 = arith.constant 0 : index
    %c5_39 = arith.constant 5 : index
    %60 = vector.load %arg6[%c0_38, %c5_39] : memref<24x9xf32, #tpu.memory_space<vmem>>, vector<24x1xf32>
    %61 = vector.broadcast %60 : vector<24x1xf32> to vector<24x256xf32>
    %62 = arith.mulf %61, %59 : vector<24x256xf32>
    %63 = arith.addf %55, %62 : vector<24x256xf32>
    %c0_40 = arith.constant 0 : index
    %c143 = arith.constant 143 : index
    %64 = vector.load %arg13[%c0_40, %c143] : memref<24x512xf32, #tpu.memory_space<vmem>>, vector<24x256xf32>
    %c6 = arith.constant 6 : index
    %c0_41 = arith.constant 0 : index
    %65 = vector.load %arg2[%c6, %c0_41] : memref<9x256xf32, #tpu.memory_space<vmem>>, vector<1x256xf32>
    %66 = vector.broadcast %65 : vector<1x256xf32> to vector<24x256xf32>
    %67 = arith.mulf %64, %66 : vector<24x256xf32>
    %c0_42 = arith.constant 0 : index
    %c6_43 = arith.constant 6 : index
    %68 = vector.load %arg6[%c0_42, %c6_43] : memref<24x9xf32, #tpu.memory_space<vmem>>, vector<24x1xf32>
    %69 = vector.broadcast %68 : vector<24x1xf32> to vector<24x256xf32>
    %70 = arith.mulf %69, %67 : vector<24x256xf32>
    %71 = arith.addf %63, %70 : vector<24x256xf32>
    %c0_44 = arith.constant 0 : index
    %c144 = arith.constant 144 : index
    %72 = vector.load %arg13[%c0_44, %c144] : memref<24x512xf32, #tpu.memory_space<vmem>>, vector<24x256xf32>
    %c7 = arith.constant 7 : index
    %c0_45 = arith.constant 0 : index
    %73 = vector.load %arg2[%c7, %c0_45] : memref<9x256xf32, #tpu.memory_space<vmem>>, vector<1x256xf32>
    %74 = vector.broadcast %73 : vector<1x256xf32> to vector<24x256xf32>
    %75 = arith.mulf %72, %74 : vector<24x256xf32>
    %c0_46 = arith.constant 0 : index
    %c7_47 = arith.constant 7 : index
    %76 = vector.load %arg6[%c0_46, %c7_47] : memref<24x9xf32, #tpu.memory_space<vmem>>, vector<24x1xf32>
    %77 = vector.broadcast %76 : vector<24x1xf32> to vector<24x256xf32>
    %78 = arith.mulf %77, %75 : vector<24x256xf32>
    %79 = arith.addf %71, %78 : vector<24x256xf32>
    %c0_48 = arith.constant 0 : index
    %c145 = arith.constant 145 : index
    %80 = vector.load %arg13[%c0_48, %c145] : memref<24x512xf32, #tpu.memory_space<vmem>>, vector<24x256xf32>
    %c8 = arith.constant 8 : index
    %c0_49 = arith.constant 0 : index
    %81 = vector.load %arg2[%c8, %c0_49] : memref<9x256xf32, #tpu.memory_space<vmem>>, vector<1x256xf32>
    %82 = vector.broadcast %81 : vector<1x256xf32> to vector<24x256xf32>
    %83 = arith.mulf %80, %82 : vector<24x256xf32>
    %c0_50 = arith.constant 0 : index
    %c8_51 = arith.constant 8 : index
    %84 = vector.load %arg6[%c0_50, %c8_51] : memref<24x9xf32, #tpu.memory_space<vmem>>, vector<24x1xf32>
    %85 = vector.broadcast %84 : vector<24x1xf32> to vector<24x256xf32>
    %86 = arith.mulf %85, %83 : vector<24x256xf32>
    %87 = arith.addf %79, %86 : vector<24x256xf32>
    %c0_52 = arith.constant 0 : index
    %c0_53 = arith.constant 0 : index
    %88 = vector.load %arg7[%c0_52, %c0_53] : memref<24x1xf32, #tpu.memory_space<vmem>>, vector<24x1xf32>
    %89 = vector.broadcast %88 : vector<24x1xf32> to vector<24x256xf32>
    %90 = arith.mulf %87, %89 : vector<24x256xf32>
    %c0_54 = arith.constant 0 : index
    %c0_55 = arith.constant 0 : index
    %91 = vector.load %arg8[%c0_54, %c0_55] : memref<24x1xf32, #tpu.memory_space<vmem>>, vector<24x1xf32>
    %92 = vector.broadcast %91 : vector<24x1xf32> to vector<24x256xf32>
    %93 = arith.addf %90, %92 : vector<24x256xf32>
    %cst_56 = arith.constant 0.000000e+00 : f32
    %cst_57 = arith.constant 6.000000e+00 : f32
    %94 = vector.broadcast %cst_56 : f32 to vector<24x256xf32>
    %95 = arith.maximumf %94, %93 : vector<24x256xf32>
    %96 = vector.broadcast %cst_57 : f32 to vector<24x256xf32>
    %97 = arith.minimumf %96, %95 : vector<24x256xf32>
    %c0_58 = arith.constant 0 : index
    %c0_59 = arith.constant 0 : index
    %98 = vector.load %arg9[%c0_58, %c0_59] : memref<4x24xf32, #tpu.memory_space<vmem>>, vector<4x24xf32>
    %cst_60 = arith.constant dense<0.000000e+00> : vector<4x256xf32>
    %99 = tpu.matmul %98, %97, %cst_60 {dimension_numbers = #tpu.dot_dimension_numbers<[1], [0], [0], [1], [0, 0, 1, 1], [], []>} : vector<4x24xf32>, vector<24x256xf32>, vector<4x256xf32> -> vector<4x256xf32>
    %c0_61 = arith.constant 0 : index
    %c0_62 = arith.constant 0 : index
    %100 = vector.load %arg10[%c0_61, %c0_62] : memref<4x1xf32, #tpu.memory_space<vmem>>, vector<4x1xf32>
    %101 = vector.broadcast %100 : vector<4x1xf32> to vector<4x256xf32>
    %102 = arith.mulf %99, %101 : vector<4x256xf32>
    %c0_63 = arith.constant 0 : index
    %c0_64 = arith.constant 0 : index
    %103 = vector.load %arg11[%c0_63, %c0_64] : memref<4x1xf32, #tpu.memory_space<vmem>>, vector<4x1xf32>
    %104 = vector.broadcast %103 : vector<4x1xf32> to vector<4x256xf32>
    %105 = arith.addf %102, %104 : vector<4x256xf32>
    %cst_65 = arith.constant 0.000000e+00 : f32
    %cst_66 = arith.constant 6.000000e+00 : f32
    %106 = vector.broadcast %cst_65 : f32 to vector<4x256xf32>
    %107 = arith.maximumf %106, %105 : vector<4x256xf32>
    %108 = vector.broadcast %cst_66 : f32 to vector<4x256xf32>
    %109 = arith.minimumf %108, %107 : vector<4x256xf32>
    %110 = arith.addf %109, %1 : vector<4x256xf32>
    %c0_67 = arith.constant 0 : index
    %c0_68 = arith.constant 0 : index
    %c0_69 = arith.constant 0 : index
    %111 = vector.load %arg12[%c0_67, %c0_68, %c0_69] : memref<1x4x256xf32, #tpu.memory_space<vmem>>, vector<1x4x256xf32>
    %112 = vector.shape_cast %111 : vector<1x4x256xf32> to vector<4x256xf32>
    %113 = vector.shape_cast %110 : vector<4x256xf32> to vector<1x4x256xf32>
    tpu.vector_store %arg12[%c0_67, %c0_68, %c0_69], %113 {strides = array<i32>} : memref<1x4x256xf32, #tpu.memory_space<vmem>>, vector<1x4x256xf32>,
    return
  }
  func.func @transform_0(%arg0: i32) -> (i32, i32, i32) {
    %c0_i32 = arith.constant 0 : i32
    %c0_i32_0 = arith.constant 0 : i32
    %c0_i32_1 = arith.constant 0 : i32
    return %arg0, %c0_i32, %c0_i32_0 : i32, i32, i32
  }
  func.func @transform_1(%arg0: i32) -> (i32, i32) {
    %c0_i32 = arith.constant 0 : i32
    %c0_i32_0 = arith.constant 0 : i32
    %c0_i32_1 = arith.constant 0 : i32
    return %c0_i32, %c0_i32_0 : i32, i32
  }
  func.func @transform_2(%arg0: i32) -> (i32, i32) {
    %c0_i32 = arith.constant 0 : i32
    %c0_i32_0 = arith.constant 0 : i32
    %c0_i32_1 = arith.constant 0 : i32
    return %c0_i32, %c0_i32_0 : i32, i32
  }
  func.func @transform_3(%arg0: i32) -> (i32, i32) {
    %c0_i32 = arith.constant 0 : i32
    %c0_i32_0 = arith.constant 0 : i32
    %c0_i32_1 = arith.constant 0 : i32
    return %c0_i32, %c0_i32_0 : i32, i32
  }
  func.func @transform_4(%arg0: i32) -> (i32, i32) {
    %c0_i32 = arith.constant 0 : i32
    %c0_i32_0 = arith.constant 0 : i32
    %c0_i32_1 = arith.constant 0 : i32
    return %c0_i32, %c0_i32_0 : i32, i32
  }
  func.func @transform_5(%arg0: i32) -> (i32, i32) {
    %c0_i32 = arith.constant 0 : i32
    %c0_i32_0 = arith.constant 0 : i32
    %c0_i32_1 = arith.constant 0 : i32
    return %c0_i32, %c0_i32_0 : i32, i32
  }
  func.func @transform_6(%arg0: i32) -> (i32, i32) {
    %c0_i32 = arith.constant 0 : i32
    %c0_i32_0 = arith.constant 0 : i32
    %c0_i32_1 = arith.constant 0 : i32
    return %c0_i32, %c0_i32_0 : i32, i32
  }
  func.func @transform_7(%arg0: i32) -> (i32, i32) {
    %c0_i32 = arith.constant 0 : i32
    %c0_i32_0 = arith.constant 0 : i32
    %c0_i32_1 = arith.constant 0 : i32
    return %c0_i32, %c0_i32_0 : i32, i32
  }
  func.func @transform_8(%arg0: i32) -> (i32, i32) {
    %c0_i32 = arith.constant 0 : i32
    %c0_i32_0 = arith.constant 0 : i32
    %c0_i32_1 = arith.constant 0 : i32
    return %c0_i32, %c0_i32_0 : i32, i32
  }
  func.func @transform_9(%arg0: i32) -> (i32, i32) {
    %c0_i32 = arith.constant 0 : i32
    %c0_i32_0 = arith.constant 0 : i32
    %c0_i32_1 = arith.constant 0 : i32
    return %c0_i32, %c0_i32_0 : i32, i32
  }
  func.func @transform_10(%arg0: i32) -> (i32, i32) {
    %c0_i32 = arith.constant 0 : i32
    %c0_i32_0 = arith.constant 0 : i32
    %c0_i32_1 = arith.constant 0 : i32
    return %c0_i32, %c0_i32_0 : i32, i32
  }
  func.func @transform_11(%arg0: i32) -> (i32, i32, i32) {
    %c0_i32 = arith.constant 0 : i32
    %c0_i32_0 = arith.constant 0 : i32
    %c0_i32_1 = arith.constant 0 : i32
    return %arg0, %c0_i32, %c0_i32_0 : i32, i32, i32
  }
}

</mosaic_0001>

<bundles_post_ra>
// kernel: inverted_block_forward.1
= control target key start
LH: loop header
LB: loop body
LE: loop exit
PB: predicated region body
PF: predicated region fallthrough
CT: control target
= control target key end

     0   :  { %s1878_s17 = smov 0   ;;  %s2666_s0 = inlined_call_operand.vmem [shape: f32[2,4,256], index: 0, kind: input, shape index: {}]   ;;  %s2667_s1 = inlined_call_operand.vmem [shape: f32[9,256], index: 1, kind: input, shape index: {}]   ;;  %s2668_s2 = inlined_call_operand.vmem [shape: f32[24,4], index: 2, kind: input, shape index: {}]   ;;  %s2669_s3 = inlined_call_operand.vmem [shape: f32[24,1], index: 3, kind: input, shape index: {}]   ;;  %s2670_s4 = inlined_call_operand.vmem [shape: f32[24,1], index: 4, kind: input, shape index: {}]   ;;  %s2671_s5 = inlined_call_operand.vmem [shape: f32[24,9], index: 5, kind: input, shape index: {}]   ;;  %s2672_s6 = inlined_call_operand.vmem [shape: f32[24,1], index: 6, kind: input, shape index: {}]   ;;  %s2673_s7 = inlined_call_operand.vmem [shape: f32[24,1], index: 7, kind: input, shape index: {}]   ;;  %s2674_s8 = inlined_call_operand.vmem [shape: f32[4,24], index: 8, kind: input, shape index: {}]   ;;  %s2675_s9 = inlined_call_operand.vmem [shape: f32[4,1], index: 9, kind: input, shape index: {}]   ;;  %s2676_s10 = inlined_call_operand.vmem [shape: f32[4,1], index: 10, kind: input, shape index: {}]   ;;  %s2677_s11 = inlined_call_operand.vmem [shape: f32[2,4,256], index: 11, kind: output, shape index: {}]  }
   0x1 LB: > { %s1684_s18 = sadd.s32 4294967295, %s1793_s17   ;;  %p1688_p0 = scmp.ge.s32.totalorder %s1793_s17, 1  ;;  %s1793_s17 = sphi %s1878_s17, %s21_s17  }
   0x2   : > { %p337_p1 = scmp.lt.s32.totalorder %s1793_s17, 3 }
   0x4   : > { %p338_p2 = pnand %p1688_p0, %p337_p1 }
   0x6   : > { %341 = sbr.rel (%p338_p2) target bundleno = 854 (0x356), region = 64 }
   0xd   : > { %v515_v0 = vld [vmem:[%s2670_s4] sm:$0xff]  ;;  %v574_v2 = vlaneseq  ;;  %v1795_v3 = vmov 0   ;;  %v1796_v4 = vmov 1   ;;  %p377_p3 = scmp.lt.s32.totalorder %s1684_s18, 1  ;;  %v516_v5 = vld [vmem:[%s2670_s4 + $0x8] sm:$0xff]  ;;  %v1797_v6 = vmov 0.0  }
   0xe   : > { %v1892_v1 = vld [vmem:[%s2671_s5] sm:$0xff]  ;;  %1745 = vset.pattern.permute.xlu1 %v1795_v3  ;;  %1746 = vset.pattern.permute.xlu0 %v1796_v4  ;;  %v1905_v7 = vld [vmem:[%s2671_s5 + $0x8] sm:$0xff]  ;;  %v1798_v9 = vmov 2   ;;  %vm403_vm0 = vcmask 1043456   ;;  %v517_v11 = vld [vmem:[%s2670_s4 + $0x10] sm:$0xff]  ;;  %vm393_vm1 = vcmask 31744  }
   0xf   : > { %520 = vperm.xlu1 %1745, %v515_v0   ;;  %666 = vperm.xlu0 %1746, %v1892_v1   ;;  %s2697_s18 = smov (!%p377_p3, %s1684_s18), 1  ;;  %v575_v8 = vshrl.u32 %v574_v2, 7  ;;  %v388_v14 = vld [vmem:[%s2668_s2] sm:$0xff]  ;;  %v1799_v16 = vmov 3   ;;  %v389_v18 = vld [vmem:[%s2668_s2 + $0x8] sm:$0xff]  ;;  %s1800_s22 = smov 113  }
  0x10   : > { %472 = vmatprep.mubr.f32.mxu0 %v1797_v6  ;;  %1594 = vmatprep.mubr.f32.mxu1 %v1797_v6  ;;  %s1708_s27 = sshll.u32 %s2697_s18, 3  ;;  %v1699_v15 = vld [vmem:[%s2667_s1 + $0x2] ss:$8 sm:$0x3]  ;;  %v390_v19 = vld [vmem:[%s2668_s2 + $0x10] sm:$0xff]  ;;  %v1801_v21 = vmov 4  }
  0x11   : > { %s1914_s30 = scalar_lea.vmem %s2666_s0, %s1708_s27  ;;  %v1923_v13 = vsub.s32 0, %v575_v8  ;;  %v1698_v20 = vld [vmem:[%s2667_s1 + $0x1] ss:$8 sm:$0x3]  ;;  %v1957_v24 = vsub.s32 1, %v575_v8  ;;  %s1802_s12 = smov 112  }
  0x12   : > { %v387_v10 = vld [vmem:[%s1914_s30] sm:$0xff]  ;;  %s1803_s13 = smov 127   ;;  %v1804_v27 = vmov 5   ;;  %v1805_v29 = vmov 6   ;;  %v602_v30 = vld [vmem:[%s2671_s5 + $0x10] sm:$0xff]  ;;  %s1806_s20 = smov 1  }
  0x13   : > { %525 = vperm.xlu1 %1745, %v516_v5   ;;  %1749 = vset.pattern.permute.xlu0 %v1798_v9  ;;  %v1921_v12 = vcombine.high %v387_v10, %v387_v10  ;;  %v744_v17 = vrot.slane %v1699_v15, %v1923_v13  ;;  %v1700_v22 = vld [vmem:[%s2667_s1 + $0x3] ss:$8 sm:$0x3]  ;;  %v642_v23 = vrot.slane %v1698_v20, %v1923_v13  ;;  %v1701_v28 = vld [vmem:[%s2667_s1 + $0x5] ss:$8 sm:$0x3]  ;;  %s386_s25 = scalar_lea.vmem %s2677_s11, %s1708_s27 }
  0x14   : > { %772 = vperm.xlu0 %1749, %v1905_v7   ;;  %v846_v25 = vrot.slane %v1700_v22, %v1923_v13  ;;  %v646_v26 = vrot.slane %v1698_v20, %v1957_v24  ;;  %v1012_v31 = vrot.slane %v1701_v28, %v1923_v13  ;;  %v748_v32 = vrot.slane %v1699_v15, %v1957_v24  ;;  %v1702_v34 = vld [vmem:[%s2667_s1 + $0x6] ss:$8 sm:$0x3]  ;;  %v1703_v36 = vld [vmem:[%s2667_s1 + $0x7] ss:$8 sm:$0x3] }
  0x15   : > { %2680 = vst [vmem:[#allocation3_spill] sm:$0xff] %v1921_v12  ;;  %1693 = vmatprep.subr.msk.mxu0 %vm403_vm0, %v1921_v12  ;;  %v1807_v33 = vmov 7   ;;  %v1114_v35 = vrot.slane %v1702_v34, %v1923_v13  ;;  %s1808_s26 = smov 15   ;;  %v1216_v37 = vrot.slane %v1703_v36, %v1923_v13  ;;  %v850_v38 = vrot.slane %v1700_v22, %v1957_v24  ;;  %v491_v40 = vld [vmem:[%s2669_s3] sm:$0xff]  ;;  %v492_v41 = vld [vmem:[%s2669_s3 + $0x8] sm:$0xff]  ;;  %v493_v43 = vld [vmem:[%s2669_s3 + $0x10] sm:$0xff] }
  0x16   : > { %1694 = vmatpush1.msk.msra.mxu0 %vm403_vm0, %v387_v10  ;;  %v1810_v39 = vmov 8   ;;  %v1016_v42 = vrot.slane %v1701_v28, %v1957_v24  ;;  %v572_v44 = vld [vmem:[%s2667_s1] ss:$8 sm:$0x3]  ;;  %s1811_s24 = smov 111   ;;  %v1118_v46 = vrot.slane %v1702_v34, %v1957_v24  ;;  %v1220_v47 = vrot.slane %v1703_v36, %v1957_v24  ;;  %s1812_s28 = smov 17  }
  0x17   : > { %530 = vperm.xlu1 %1745, %v517_v11   ;;  %1695 = vmatmul.mubr.msk.f32.vlgmr.msra.gmra.mrb[0].mxu0 %vm393_vm1, %v388_v14  ;;  %v577_v45 = vrot.slane %v572_v44, %v1923_v13  ;;  %v1704_v48 = vld [vmem:[%s2667_s1 + $0x10] ss:$8 sm:$0x3]  ;;  %v581_v51 = vrot.slane %v572_v44, %v1957_v24  ;;  %s1815_s29 = smov 96   ;;  %s1816_s21 = smov 95   ;;  %vm1327_vm2 = vcmask 138240  }
  0x18   : > { %1750 = vset.pattern.permute.xlu0 %v1799_v16  ;;  %478 = vmatprep.mubr.f32.mxu0 %v1797_v6  ;;  %v1318_v49 = vrot.slane %v1704_v48, %v1923_v13  ;;  %v1322_v50 = vrot.slane %v1704_v48, %v1957_v24  ;;  %vm753_vm3 = vcmask 924672   ;;  %s1817_s15 = smov 94   ;;  %vm713_vm4 = vcmask 1039360  }
  0x19   : > { %869 = vperm.xlu0 %1750, %v1892_v1   ;;  %vm651_vm5 = vcmask 916480   ;;  %vm586_vm6 = vcmask 908288   ;;  %vm1021_vm7 = vcmask 7168   ;;  %vm1123_vm8 = vcmask 121856  }
  0x1a   : > { %vm1225_vm9 = vcmask 130048   ;;  %vm815_vm10 = vcmask 1031168   ;;  %vm1083_vm11 = vcmask 900096   ;;  %vm1185_vm12 = vcmask 785408  }
  0x1b   : > { %1747 = vset.pattern.permute.xlu1 %v1796_v4  ;;  %1696 = vmatmul.mubr.msk.f32.gmra.mrb[2].mxu0 %vm393_vm1, %v389_v18  ;;  %vm1287_vm13 = vcmask 777216   ;;  %vm1389_vm14 = vcmask 769024   ;;  %vm1526_vm15 = vcmask 195584  }
  0x1c   : > { %670 = vperm.xlu1 %1747, %v1905_v7   ;;  %484 = vmatprep.mubr.f32.mxu0 %v1797_v6 }
  0x1d   : > { %749 = vrot.lane.b32.xlu0 %v744_v17, %s1800_s22 }
  0x1e   : > { %1753 = vset.pattern.permute.xlu0 %v1801_v21 }
  0x1f   : > { %1697 = vmatmul.mubr.msk.f32.gmra.mrb[4].mxu0 %vm393_vm1, %v390_v19 }
  0x20   : > { %1748 = vset.pattern.permute.xlu1 %v1798_v9 }
  0x21   : > { %768 = vperm.xlu1 %1748, %v1892_v1   ;;  %941 = vperm.xlu0 %1753, %v1892_v1  }
  0x25   : > { %647 = vrot.lane.b32.xlu1 %v642_v23, %s1802_s12  ;;  %851 = vrot.lane.b32.xlu0 %v846_v25, %s1803_s13 }
  0x26   : > { %1751 = vset.pattern.permute.xlu1 %v1799_v16  ;;  %1756 = vset.pattern.permute.xlu0 %v1804_v27 }
  0x29   : > { %649 = vrot.lane.b32.xlu1 %v646_v26, %s1802_s12  ;;  %1036 = vperm.xlu0 %1756, %v1892_v1  }
  0x2d   : > { %873 = vperm.xlu1 %1751, %v1905_v7   ;;  %1759 = vset.pattern.permute.xlu0 %v1805_v29 }
  0x2e   : > { %1138 = vperm.xlu0 %1759, %v1892_v1  }
  0x31   : > { %1752 = vset.pattern.permute.xlu1 %v1796_v4 }
  0x32   : > { %674 = vperm.xlu1 %1752, %v602_v30   ;;  %1017 = vrot.lane.b32.xlu0 %v1012_v31, %s1806_s20 }
  0x33   : > { %1762 = vset.pattern.permute.xlu0 %v1807_v33 }
  0x36   : > { %751 = vrot.lane.b32.xlu1 %v748_v32, %s1800_s22  ;;  %1240 = vperm.xlu0 %1762, %v1892_v1   ;;  %s1809_s22 = smov 16  }
  0x37   : > { %1754 = vset.pattern.permute.xlu1 %v1801_v21 }
  0x3a   : > { %945 = vperm.xlu1 %1754, %v1905_v7   ;;  %1119 = vrot.lane.b32.xlu0 %v1114_v35, %s1808_s26 }
  0x3e   : > { %1755 = vset.pattern.permute.xlu1 %v1798_v9  ;;  %1221 = vrot.lane.b32.xlu0 %v1216_v37, %s1809_s22 }
  0x3f   : > { %776 = vperm.xlu1 %1755, %v602_v30  }
  0x42   : > { %1248 = vperm.xlu0 %1762, %v602_v30  }
  0x43   : > { %853 = vrot.lane.b32.xlu1 %v850_v38, %s1803_s13 }
  0x44   : > { %1757 = vset.pattern.permute.xlu1 %v1804_v27 }
  0x46   : > { %1767 = vset.pattern.permute.xlu0 %v1810_v39 }
  0x47   : > { %1040 = vperm.xlu1 %1757, %v1905_v7   ;;  %1342 = vperm.xlu0 %1767, %v1892_v1  }
  0x4b   : > { %1758 = vset.pattern.permute.xlu1 %v1799_v16  ;;  %1350 = vperm.xlu0 %1767, %v602_v30  }
  0x4c   : > { %877 = vperm.xlu1 %1758, %v602_v30  }
  0x4f   : > { %1768 = vset.pattern.permute.xlu0 %v1795_v3 }
  0x50   : > { %1760 = vset.pattern.permute.xlu1 %v1805_v29  ;;  %496 = vperm.xlu0 %1768, %v491_v40  }
  0x51   : > { %1142 = vperm.xlu1 %1760, %v1905_v7  }
  0x54   : > { %501 = vperm.xlu0 %1768, %v492_v41  }
  0x55   : > { %1761 = vset.pattern.permute.xlu1 %v1801_v21 }
  0x56   : > { %949 = vperm.xlu1 %1761, %v602_v30  }
  0x58   : > { %506 = vperm.xlu0 %1768, %v493_v43  }
  0x5a   : > { %1019 = vrot.lane.b32.xlu1 %v1016_v42, %s1806_s20 }
  0x5b   : > { %1763 = vset.pattern.permute.xlu1 %v1807_v33 }
  0x5c   : > { %582 = vrot.lane.b32.xlu0 %v577_v45, %s1811_s24 }
  0x5e   : > { %1244 = vperm.xlu1 %1763, %v1905_v7  }
  0x60   : > { %615 = vperm.xlu0 %1768, %v602_v30  }
  0x62   : > { %1764 = vset.pattern.permute.xlu1 %v1804_v27 }
  0x63   : > { %1044 = vperm.xlu1 %1764, %v602_v30  }
  0x67   : > { %1121 = vrot.lane.b32.xlu1 %v1118_v46, %s1808_s26  ;;  %s1813_s26 = smov 126  }
  0x68   : > { %1765 = vset.pattern.permute.xlu1 %v1810_v39 }
  0x6b   : > { %1346 = vperm.xlu1 %1765, %v1905_v7  }
  0x6f   : > { %1766 = vset.pattern.permute.xlu1 %v1805_v29 }
  0x70   : > { %1146 = vperm.xlu1 %1766, %v602_v30  }
  0x74   : > { %1223 = vrot.lane.b32.xlu1 %v1220_v47, %s1809_s22  ;;  %s1814_s22 = smov 110  }
  0x75   : > { %1769 = vset.pattern.permute.xlu1 %v1795_v3 }
  0x78   : > { %1323 = vrot.lane.b32.xlu1 %v1318_v49, %s1812_s28 }
  0x7c   : > { %1325 = vrot.lane.b32.xlu1 %v1322_v50, %s1812_s28 }
  0x80   : > { %605 = vperm.xlu1 %1769, %v1892_v1  }
  0x84   : > { %610 = vperm.xlu1 %1769, %v1905_v7  }
  0x88   : > { %584 = vrot.lane.b32.xlu1 %v581_v51, %s1811_s24  ;;  %v1415_v51 = vld [vmem:[%s2672_s6 + $0x8] sm:$0xff] }
  0x8e   : > { %v2036_v52 = vpop.permute.xlu1 %520  ;;  %v2038_v53 = vpop.permute.xlu0 %666 }
  0x92   : > { %v2040_v54 = vpop.permute.xlu1 %525 }
  0x93   : > { %v2042_v55 = vpop.permute.xlu0 %772 }
  0x96   : > { %v2044_v56 = vpop.permute.xlu1 %530 }
  0x98   : > { %v2046_v57 = vpop.permute.xlu0 %869 }
  0x9b   : > { %v2048_v58 = vpop.permute.xlu1 %670 }
  0x9c   : > { %v2050_v59 = vpop.permute.xlu0 %749 }
  0x9d   : > { %v758_v1 = vmul.f32 0.0, %v2050_v59 }
  0x9f   : > { %v782_v5 = vmul.f32 %v2042_v55, %v758_v1 }
  0xa0   : > { %v2052_v60 = vpop.permute.xlu1 %768  ;;  %v2054_v61 = vpop.permute.xlu0 %941 }
  0xa1   : > { %v779_v8 = vmul.f32 %v2052_v60, %v758_v1 }
  0xa4   : > { %v2056_v62 = vpop.permute.xlu1 %647  ;;  %v2059_v0 = vpop.permute.xlu0 %851 }
  0xa5   : > { %v656_v63 = vmul.f32 0.0, %v2056_v62  ;;  %v2072_v7 = vmul.f32 0.0, %v2059_v0 }
  0xa7   : > { %v680_v2 = vmul.f32 %v2048_v58, %v656_v63  ;;  %v677_v3 = vmul.f32 %v2038_v53, %v656_v63  ;;  %v880_v10 = vmul.f32 %v2046_v57, %v2072_v7 }
  0xa8   : > { %v2064_v4 = vpop.permute.xlu1 %649  ;;  %v2069_v6 = vpop.permute.xlu0 %1036 }
  0xa9   : > { %701 = vrot.lane.b32.xlu1 %v680_v2, %s1803_s13  ;;  %695 = vrot.lane.b32.xlu0 %v677_v3, %s1803_s13 }
  0xac   : > { %v2075_v9 = vpop.permute.xlu1 %873 }
  0xad   : > { %803 = vrot.lane.b32.xlu1 %v782_v5, %s1813_s26  ;;  %797 = vrot.lane.b32.xlu0 %v779_v8, %s1813_s26  ;;  %v2081_v11 = vpop.permute.xlu0 %1138  ;;  %v883_v13 = vmul.f32 %v2075_v9, %v2072_v7 }
  0xb1   : > { %904 = vrot.lane.b32.xlu1 %v883_v13, %s1802_s12  ;;  %v2086_v14 = vpop.permute.xlu1 %674  ;;  %898 = vrot.lane.b32.xlu0 %v880_v10, %s1802_s12  ;;  %v2090_v16 = vpop.permute.xlu0 %1017 }
  0xb2   : > { %v683_v15 = vmul.f32 %v2086_v14, %v656_v63  ;;  %v1414_v63 = vld [vmem:[%s2672_s6] sm:$0xff] }
  0xb5   : > { %v2092_v17 = vpop.permute.xlu1 %751  ;;  %707 = vrot.lane.b32.xlu0 %v683_v15, %s1803_s13  ;;  %v2095_v18 = vpop.permute.xlu0 %1240 }
  0xb9   : > { %v2097_v19 = vpop.permute.xlu1 %945  ;;  %v2099_v20 = vpop.permute.xlu0 %1119 }
  0xbd   : > { %v2103_v22 = vpop.permute.xlu0 %1221 }
  0xbe   : > { %v2101_v21 = vpop.permute.xlu1 %776 }
  0xbf   : > { %v785_v41 = vmul.f32 %v2101_v21, %v758_v1 }
  0xc1   : > { %v2107_v24 = vpop.permute.xlu0 %1248 }
  0xc2   : > { %v2105_v23 = vpop.permute.xlu1 %853 }
  0xc6   : > { %v2109_v25 = vpop.permute.xlu1 %1040  ;;  %v2111_v26 = vpop.permute.xlu0 %1342 }
  0xca   : > { %v2115_v28 = vpop.permute.xlu0 %1350 }
  0xcb   : > { %v2113_v27 = vpop.permute.xlu1 %877 }
  0xcc   : > { %v886_v10 = vmul.f32 %v2113_v27, %v2072_v7 }
  0xcf   : > { %v497_v30 = vpop.permute.xlu0 %496 }
  0xd0   : > { %v2117_v29 = vpop.permute.xlu1 %1142 }
  0xd3   : > { %v2119_v31 = vpop.permute.xlu0 %501 }
  0xd5   : > { %v2121_v32 = vpop.permute.xlu1 %949 }
  0xd7   : > { %v507_v33 = vpop.permute.xlu0 %506 }
  0xd9   : > { %v2123_v34 = vpop.permute.xlu1 %1019 }
  0xda   : > { %v2126_v35 = vmul.f32 0.0, %v2123_v34 }
  0xdb   : > { %v2132_v38 = vpop.permute.xlu0 %582 }
  0xdc   : > { %v1049_v36 = vmul.f32 %v2069_v6, %v2126_v35  ;;  %v1052_v37 = vmul.f32 %v2109_v25, %v2126_v35  ;;  %v2137_v40 = vmul.f32 0.0, %v2132_v38 }
  0xdd   : > { %v2134_v39 = vpop.permute.xlu1 %1244 }
  0xde   : > { %1069 = vrot.lane.b32.xlu1 %v1049_v36, %s1814_s22  ;;  %1075 = vrot.lane.b32.xlu0 %v1052_v37, %s1814_s22 }
  0xdf   : > { %v2142_v42 = vpop.permute.xlu0 %615 }
  0xe0   : > { %v2146_v43 = vmul.f32 %v2142_v42, %v2137_v40 }
  0xe2   : > { %2681 = vst [vmem:[#allocation4_spill] sm:$0xff] %v2146_v43  ;;  %809 = vrot.lane.b32.xlu1 %v785_v41, %s1813_s26  ;;  %v2149_v44 = vpop.permute.xlu1 %1044 }
  0xe6   : > { %v2151_v45 = vpop.permute.xlu1 %1121 }
  0xe7   : > { %v1130_v46 = vmul.f32 0.0, %v2151_v45 }
  0xe9   : > { %v1154_v47 = vmul.f32 %v2117_v29, %v1130_v46  ;;  %v1151_v48 = vmul.f32 %v2081_v11, %v1130_v46 }
  0xea   : > { %v2156_v49 = vpop.permute.xlu1 %1346  ;;  %v474_v50 = vpop.f32.mrb[0].mxu0 }
  0xeb   : > { %1177 = vrot.lane.b32.xlu1 %v1154_v47, %s1815_s29  ;;  %1171 = vrot.lane.b32.xlu0 %v1151_v48, %s1815_s29  ;;  %v476_v1 = vpop.f32.mrb[1].mxu0  ;;  %v509_v13 = vmul.f32 %v497_v30, %v474_v50 }
  0xec   : > { %v510_v48 = vmul.f32 %v497_v30, %v476_v1  ;;  %v1442_v1 = vld [vmem:[%s2673_s7 + $0x8] sm:$0xff] }
  0xee   : > { %v480_v5 = vpop.f32.mrb[2].mxu0 }
  0xef   : > { %1424 = vperm.xlu1 %1769, %v1415_v51   ;;  %v2166_v2 = vpop.permute.xlu1 %1146  ;;  %1419 = vperm.xlu0 %1768, %v1414_v63   ;;  %v482_v8 = vpop.f32.mrb[3].mxu0 }
  0xf0   : > { %v2169_v3 = vmul.f32 %v2166_v2, %v1130_v46  ;;  %v533_v46 = vadd.f32 %v2036_v52, %v509_v13 }
  0xf2   : > { %v486_v37 = vpop.f32.mrb[4].mxu0  ;;  %v539_v13 = vmax.f32 %v533_v46, 0.0 }
  0xf3   : > { %v2173_v15 = vpop.permute.xlu1 %1223  ;;  %910 = vrot.lane.b32.xlu0 %v886_v10, %s1802_s12  ;;  %v513_v41 = vmul.f32 %v507_v33, %v486_v37  ;;  %v488_v47 = vpop.f32.mrb[5].mxu0  ;;  %v534_v37 = vadd.f32 %v2036_v52, %v510_v48 }
  0xf4   : > { %v2177_v36 = vmul.f32 0.0, %v2173_v15  ;;  %v514_v51 = vmul.f32 %v507_v33, %v488_v47  ;;  %v1441_v33 = vld [vmem:[%s2673_s7] sm:$0xff]  ;;  %v2215_v48 = vmin.f32 %v539_v13, 6.0  ;;  %v2232_v13 = vsel %vm753_vm3, %v2050_v59, %v2092_v17 }
  0xf5   : > { %v537_v63 = vadd.f32 %v2044_v56, %v513_v41 }
  0xf6   : > { %2682 = vst [vmem:[#allocation5_spill] sm:$0xff] %v2177_v36  ;;  %v1253_v7 = vmul.f32 %v2095_v18, %v2177_v36  ;;  %v1256_v50 = vmul.f32 %v2134_v39, %v2177_v36  ;;  %v538_v10 = vadd.f32 %v2044_v56, %v514_v51 }
  0xf7   : > { %v2181_v12 = vpop.permute.xlu1 %1323  ;;  %v543_v43 = vmax.f32 %v537_v63, 0.0 }
  0xf8   : > { %1273 = vrot.lane.b32.xlu1 %v1253_v7, %s1816_s21  ;;  %1279 = vrot.lane.b32.xlu0 %v1256_v50, %s1816_s21  ;;  %v544_v30 = vmax.f32 %v538_v10, 0.0  ;;  %v540_v50 = vmax.f32 %v534_v37, 0.0 }
  0xf9   : > { %v2197_v56 = vmin.f32 %v543_v43, 6.0 }
  0xfa   : > { %v2199_v47 = vmin.f32 %v544_v30, 6.0  ;;  %v1055_v30 = vmul.f32 %v2149_v44, %v2126_v35  ;;  %v2234_v35 = vmin.f32 %v540_v50, 6.0 }
  0xfb   : > { %v1326_v41 = vpop.permute.xlu1 %1325  ;;  %v2207_v7 = vmul.f32 %v2181_v12, %v2197_v56 }
  0xfc   : > { %v2203_v51 = vsel %vm1327_vm2, %v2181_v12, %v1326_v41  ;;  %v1334_v63 = vmul.f32 0.0, %v1326_v41  ;;  %1446 = vperm.xlu1 %1769, %v1441_v33   ;;  %1451 = vperm.xlu0 %1768, %v1442_v1  }
  0xfd   : > { %v1339_v46 = vmul.f32 %v2203_v51, %v2199_v47  ;;  %v2316_v36 = vmul.f32 %v2115_v28, %v2207_v7 }
  0xfe   : > { %v2212_v52 = vmul.f32 %v2115_v28, %v1334_v63  ;;  %v1355_v43 = vmul.f32 %v2111_v26, %v1334_v63  ;;  %v1358_v41 = vmul.f32 %v2156_v49, %v1334_v63  ;;  %v2254_v63 = vsel %vm713_vm4, %v2059_v0, %v2105_v23 }
  0xff   : > { %v2217_v10 = vpop.permute.xlu1 %605  ;;  %v2222_v33 = vmul.f32 %v2115_v28, %v1339_v46  ;;  %v952_v46 = vmul.f32 %v2054_v61, %v2215_v48  ;;  %2687 = vst [vmem:[#allocation10_spill] sm:$0xff] %v2316_v36 }
 0x100   : > { %2683 = vst [vmem:[#allocation6_spill] sm:$0xff] %v2212_v52  ;;  %v2226_v1 = vmul.f32 %v2217_v10, %v2137_v40  ;;  %1081 = vrot.lane.b32.xlu1 %v1055_v30, %s1814_s22  ;;  %1375 = vrot.lane.b32.xlu0 %v1355_v43, %s1817_s15  ;;  %v759_v30 = vmul.f32 %v2232_v13, %v2215_v48 }
 0x101   : > { %2684 = vst [vmem:[#allocation7_spill] sm:$0xff] %v2222_v33  ;;  %v511_v43 = vmul.f32 %v2119_v31, %v480_v5  ;;  %v2259_v5 = vsel %vm651_vm5, %v2056_v62, %v2064_v4 }
 0x102   : > { %2685 = vst [vmem:[#allocation8_spill] sm:$0xff] %v2226_v1  ;;  %v512_v1 = vmul.f32 %v2119_v31, %v482_v8  ;;  %v953_v31 = vmul.f32 %v2054_v61, %v2234_v35  ;;  %v860_v8 = vmul.f32 %v2254_v63, %v2215_v48 }
 0x103   : > { %v2236_v37 = vpop.permute.xlu1 %610  ;;  %v535_v0 = vadd.f32 %v2040_v54, %v511_v43  ;;  %v1026_v43 = vmul.f32 %v2090_v16, %v2215_v48 }
 0x104   : > { %v2246_v59 = vmul.f32 %v2236_v37, %v2137_v40  ;;  %1381 = vrot.lane.b32.xlu1 %v1358_v41, %s1817_s15  ;;  %964 = vrot.lane.b32.xlu0 %v952_v46, %s1811_s24  ;;  %v780_v40 = vmul.f32 %v2052_v60, %v759_v30  ;;  %v657_v41 = vmul.f32 %v2259_v5, %v2215_v48 }
 0x105   : > { %v536_v62 = vadd.f32 %v2040_v54, %v512_v1  ;;  %v881_v61 = vmul.f32 %v2046_v57, %v860_v8  ;;  %v541_v33 = vmax.f32 %v535_v0, 0.0  ;;  %v1332_v54 = vmul.f32 %v2181_v12, %v2215_v48 }
 0x106   : > { %2686 = vst [vmem:[#allocation9_spill] sm:$0xff] %v2246_v59  ;;  %v678_v30 = vmul.f32 %v2038_v53, %v657_v41  ;;  %v1128_v59 = vmul.f32 %v2099_v20, %v2215_v48  ;;  %v2296_v8 = vsel %vm1123_vm8, %v2099_v20, %v2151_v45  ;;  %v1134_v41 = vmul.f32 %v2099_v20, %v2197_v56 }
 0x107   : > { %v585_v50 = vpop.permute.xlu1 %584  ;;  %v542_v1 = vmax.f32 %v536_v62, 0.0  ;;  %v2302_v0 = vsel %vm1225_vm9, %v2103_v22, %v2173_v15  ;;  %v1353_v52 = vmul.f32 %v2111_v26, %v1332_v54 }
 0x108   : > { %v587_v46 = vsel %vm586_vm6, %v2132_v38, %v585_v50  ;;  %799 = vrot.lane.b32.xlu0 %v780_v40, %s1813_s26  ;;  %966 = vrot.lane.b32.xlu1 %v953_v31, %s1811_s24  ;;  %v2284_v38 = vmul.f32 %v2232_v13, %v2197_v56  ;;  %v1230_v40 = vmul.f32 %v2103_v22, %v2215_v48 }
 0x109   : > { %v2292_v31 = vsel %vm1021_vm7, %v2090_v16, %v2123_v34  ;;  %v1149_v62 = vmul.f32 %v2081_v11, %v1128_v59  ;;  %v2308_v34 = vmin.f32 %v541_v33, 6.0  ;;  %v2312_v45 = vmul.f32 %v2166_v2, %v1134_v41 }
 0x10a   : > { %v2318_v15 = vmin.f32 %v542_v1, 6.0  ;;  %v1251_v59 = vmul.f32 %v2095_v18, %v1230_v40  ;;  %v1027_v33 = vmul.f32 %v2292_v31, %v2234_v35  ;;  %v2332_v28 = vmul.f32 %v2302_v0, %v2199_v47 }
 0x10b   : > { %v592_v7 = vmul.f32 %v587_v46, %v2215_v48  ;;  %v593_v1 = vmul.f32 %v585_v50, %v2234_v35  ;;  %v595_v41 = vmul.f32 %v587_v46, %v2308_v34 }
 0x10c   : > { %900 = vrot.lane.b32.xlu0 %v881_v61, %s1802_s12  ;;  %697 = vrot.lane.b32.xlu1 %v678_v30, %s1803_s13  ;;  %v1047_v61 = vmul.f32 %v2069_v6, %v1026_v43  ;;  %v1135_v30 = vmul.f32 %v2296_v8, %v2199_v47  ;;  %v658_v43 = vmul.f32 %v2064_v4, %v2234_v35 }
 0x10d   : > { %v596_v40 = vmul.f32 %v585_v50, %v2318_v15  ;;  %v2341_v36 = vmul.f32 %v2217_v10, %v592_v7  ;;  %v2349_v48 = vmul.f32 %v2236_v37, %v595_v41  ;;  %v1048_v7 = vmul.f32 %v2069_v6, %v1027_v33 }
 0x10e   : > { %v2328_v54 = vmul.f32 %v2166_v2, %v1135_v30  ;;  %v2344_v2 = vmul.f32 %v2217_v10, %v593_v1  ;;  %v1231_v10 = vmul.f32 %v2302_v0, %v2234_v35  ;;  %v954_v6 = vmul.f32 %v2097_v19, %v2308_v34 }
 0x10f   : > { %v2352_v30 = vmul.f32 %v2236_v37, %v596_v40  ;;  %v1129_v33 = vmul.f32 %v2296_v8, %v2234_v35  ;;  %v762_v41 = vmul.f32 %v2232_v13, %v2308_v34  ;;  %v955_v13 = vmul.f32 %v2097_v19, %v2318_v15 }
 0x110   : > { %1167 = vrot.lane.b32.xlu0 %v1149_v62, %s1815_s29  ;;  %1065 = vrot.lane.b32.xlu1 %v1047_v61, %s1814_s22  ;;  %v598_v62 = vmul.f32 %v587_v46, %v2197_v56  ;;  %v599_v61 = vmul.f32 %v585_v50, %v2199_v47  ;;  %v1252_v37 = vmul.f32 %v2095_v18, %v1231_v10 }
 0x111   : > { %v660_v18 = vmul.f32 %v2259_v5, %v2308_v34  ;;  %v1335_v10 = vmul.f32 %v2181_v12, %v2308_v34  ;;  %v1233_v19 = vmul.f32 %v2103_v22, %v2308_v34  ;;  %v661_v12 = vmul.f32 %v2064_v4, %v2318_v15 }
 0x112   : > { %v2355_v46 = vmul.f32 %v2142_v42, %v598_v62  ;;  %v2358_v50 = vmul.f32 %v2142_v42, %v599_v61  ;;  %v861_v42 = vmul.f32 %v2105_v23, %v2234_v35  ;;  %v783_v62 = vmul.f32 %v2042_v55, %v762_v41 }
 0x113   : > { %v863_v61 = vmul.f32 %v2254_v63, %v2308_v34 }
 0x114   : > { %1371 = vrot.lane.b32.xlu0 %v1353_v52, %s1817_s15  ;;  %1269 = vrot.lane.b32.xlu1 %v1251_v59, %s1816_s21  ;;  %v679_v52 = vmul.f32 %v2038_v53, %v658_v43  ;;  %v760_v59 = vmul.f32 %v2092_v17, %v2234_v35  ;;  %v882_v53 = vmul.f32 %v2046_v57, %v861_v42 }
 0x115   : > { %v1150_v43 = vmul.f32 %v2081_v11, %v1129_v33  ;;  %v681_v57 = vmul.f32 %v2048_v58, %v660_v18  ;;  %v884_v11 = vmul.f32 %v2075_v9, %v863_v61  ;;  %v682_v42 = vmul.f32 %v2048_v58, %v661_v12 }
 0x116   : > { %v781_v1 = vmul.f32 %v2052_v60, %v760_v59  ;;  %v1333_v60 = vmul.f32 %v2203_v51, %v2234_v35  ;;  %v1029_v35 = vmul.f32 %v2090_v16, %v2308_v34  ;;  %v1356_v59 = vmul.f32 %v2156_v49, %v1335_v10  ;;  %v1443_v10 = vld [vmem:[%s2673_s7 + $0x10] sm:$0xff] }
 0x117   : > { %v864_v33 = vmul.f32 %v2105_v23, %v2318_v15 }
 0x118   : > { %1067 = vrot.lane.b32.xlu0 %v1048_v7, %s1814_s22  ;;  %699 = vrot.lane.b32.xlu1 %v679_v52, %s1803_s13  ;;  %v1354_v40 = vmul.f32 %v2111_v26, %v1333_v60  ;;  %v1131_v26 = vmul.f32 %v2099_v20, %v2308_v34  ;;  %v1050_v7 = vmul.f32 %v2109_v25, %v1029_v35  ;;  %v2690_v35 = vld [vmem:[#allocation6_spill] sm:$0xff] }
 0x119   : > { %v1254_v20 = vmul.f32 %v2134_v39, %v1233_v19  ;;  %v1336_v34 = vmul.f32 %v2203_v51, %v2318_v15  ;;  %v885_v58 = vmul.f32 %v2075_v9, %v864_v33  ;;  %v1030_v51 = vmul.f32 %v2292_v31, %v2318_v15 }
 0x11a   : > { %v1152_v52 = vmul.f32 %v2117_v29, %v1131_v26  ;;  %v866_v60 = vmul.f32 %v2254_v63, %v2197_v56 }
 0x11b   : > { %v1051_v18 = vmul.f32 %v2109_v25, %v1030_v51  ;;  %v956_v25 = vmul.f32 %v2121_v32, %v2197_v56  ;;  %v696_v41 = vpop.permute.xlu0 %695  ;;  %v2692_v51 = vld [vmem:[#allocation8_spill] sm:$0xff] }
 0x11c   : > { %1271 = vrot.lane.b32.xlu0 %v1252_v37, %s1816_s21  ;;  %801 = vrot.lane.b32.xlu1 %v781_v1, %s1813_s26  ;;  %v1132_v37 = vmul.f32 %v2296_v8, %v2318_v15  ;;  %v1357_v8 = vmul.f32 %v2156_v49, %v1336_v34  ;;  %v663_v49 = vmul.f32 %v2259_v5, %v2197_v56 }
 0x11e   : > { %v1153_v1 = vmul.f32 %v2117_v29, %v1132_v37  ;;  %v957_v29 = vmul.f32 %v2121_v32, %v2199_v47  ;;  %v684_v9 = vmul.f32 %v2086_v14, %v663_v49 }
 0x120   : > { %902 = vrot.lane.b32.xlu1 %v882_v53, %s1802_s12  ;;  %968 = vrot.lane.b32.xlu0 %v954_v6, %s1811_s24  ;;  %v763_v53 = vmul.f32 %v2092_v17, %v2318_v15 }
 0x122   : > { %v784_v6 = vmul.f32 %v2042_v55, %v763_v53  ;;  %v1234_v55 = vmul.f32 %v2302_v0, %v2318_v15  ;;  %v1033_v0 = vmul.f32 %v2292_v31, %v2199_v47  ;;  %v1032_v15 = vmul.f32 %v2090_v16, %v2197_v56 }
 0x123   : > { %v664_v31 = vmul.f32 %v2064_v4, %v2199_v47 }
 0x124   : > { %1169 = vrot.lane.b32.xlu1 %v1150_v43, %s1815_s29  ;;  %703 = vrot.lane.b32.xlu0 %v681_v57, %s1803_s13  ;;  %v1255_v5 = vmul.f32 %v2134_v39, %v1234_v55  ;;  %v887_v43 = vmul.f32 %v2113_v27, %v866_v60  ;;  %v766_v57 = vmul.f32 %v2092_v17, %v2199_v47 }
 0x125   : > { %v786_v39 = vmul.f32 %v2101_v21, %v2284_v38  ;;  %v1054_v17 = vmul.f32 %v2149_v44, %v1033_v0  ;;  %v1053_v32 = vmul.f32 %v2149_v44, %v1032_v15  ;;  %v685_v16 = vmul.f32 %v2086_v14, %v664_v31  ;;  %v2688_v14 = vld [vmem:[#allocation5_spill] sm:$0xff] }
 0x126   : > { %v787_v63 = vmul.f32 %v2101_v21, %v766_v57  ;;  %v798_v21 = vpop.permute.xlu0 %797  ;;  %v1236_v38 = vmul.f32 %v2103_v22, %v2197_v56  ;;  %v1259_v22 = vmul.f32 %v2107_v24, %v2688_v14 }
 0x128   : > { %1373 = vrot.lane.b32.xlu1 %v1354_v40, %s1817_s15  ;;  %805 = vrot.lane.b32.xlu0 %v783_v62, %s1813_s26  ;;  %v2476_v40 = vpop.permute.xlu1 %701  ;;  %v867_v62 = vmul.f32 %v2105_v23, %v2199_v47  ;;  %v1257_v44 = vmul.f32 %v2107_v24, %v1236_v38  ;;  %v2689_v47 = vld [vmem:[#allocation10_spill] sm:$0xff] }
 0x12a   : > { %v899_v61 = vpop.permute.xlu0 %898 }
 0x12c   : > { %906 = vrot.lane.b32.xlu0 %v884_v11, %s1802_s12  ;;  %970 = vrot.lane.b32.xlu1 %v955_v13, %s1811_s24  ;;  %v2489_v4 = vpop.permute.xlu1 %803  ;;  %v1258_v13 = vmul.f32 %v2107_v24, %v2332_v28  ;;  %v2691_v24 = vld [vmem:[#allocation7_spill] sm:$0xff] }
 0x130   : > { %1071 = vrot.lane.b32.xlu0 %v1050_v7, %s1814_s22  ;;  %1173 = vrot.lane.b32.xlu1 %v1152_v52, %s1815_s29  ;;  %v2497_v23 = vpop.permute.xlu1 %904 }
 0x134   : > { %1275 = vrot.lane.b32.xlu0 %v1254_v20, %s1816_s21  ;;  %1377 = vrot.lane.b32.xlu1 %v1356_v59, %s1817_s15 }
 0x138   : > { %1175 = vrot.lane.b32.xlu0 %v1153_v1, %s1815_s29  ;;  %705 = vrot.lane.b32.xlu1 %v682_v42, %s1803_s13 }
 0x13c   : > { %1379 = vrot.lane.b32.xlu0 %v1357_v8, %s1817_s15  ;;  %807 = vrot.lane.b32.xlu1 %v784_v6, %s1813_s26 }
 0x140   : > { %908 = vrot.lane.b32.xlu1 %v885_v58, %s1802_s12  ;;  %974 = vrot.lane.b32.xlu0 %v957_v29, %s1811_s24 }
 0x144   : > { %1073 = vrot.lane.b32.xlu1 %v1051_v18, %s1814_s22  ;;  %709 = vrot.lane.b32.xlu0 %v684_v9, %s1803_s13 }
 0x148   : > { %1277 = vrot.lane.b32.xlu1 %v1255_v5, %s1816_s21  ;;  %912 = vrot.lane.b32.xlu0 %v887_v43, %s1802_s12 }
 0x14c   : > { %972 = vrot.lane.b32.xlu1 %v956_v25, %s1811_s24  ;;  %813 = vrot.lane.b32.xlu0 %v787_v63, %s1813_s26 }
 0x150   : > { %811 = vrot.lane.b32.xlu1 %v786_v39, %s1813_s26  ;;  %1079 = vrot.lane.b32.xlu0 %v1054_v17, %s1814_s22  ;;  %v2507_v56 = vpop.permute.xlu1 %1069 }
 0x154   : > { %1077 = vrot.lane.b32.xlu1 %v1053_v32, %s1814_s22  ;;  %1179 = vrot.lane.b32.xlu0 %v2312_v45, %s1815_s29  ;;  %v888_v45 = vmul.f32 %v2113_v27, %v867_v62  ;;  %v1416_v27 = vld [vmem:[%s2672_s6 + $0x10] sm:$0xff] }
 0x158   : > { %1183 = vrot.lane.b32.xlu0 %v2169_v3, %s1815_s29  ;;  %711 = vrot.lane.b32.xlu1 %v685_v16, %s1803_s13  ;;  %v2502_v3 = vpop.permute.xlu0 %707 }
 0x15c   : > { %1281 = vrot.lane.b32.xlu0 %v1257_v44, %s1816_s21  ;;  %914 = vrot.lane.b32.xlu1 %v888_v45, %s1802_s12  ;;  %v2511_v11 = vpop.permute.xlu0 %1075 }
 0x160   : > { %1285 = vrot.lane.b32.xlu0 %v1259_v22, %s1816_s21  ;;  %1181 = vrot.lane.b32.xlu1 %v2328_v54, %s1815_s29  ;;  %v2518_v54 = vpop.permute.xlu1 %809  ;;  %v2520_v26 = vpop.permute.xlu0 %1171 }
 0x164   : > { %1383 = vrot.lane.b32.xlu0 %v2689_v47, %s1817_s15  ;;  %1429 = vperm.xlu1 %1769, %v1416_v27   ;;  %v2525_v7 = vpop.permute.xlu1 %1177 }
 0x168   : > { %1387 = vrot.lane.b32.xlu0 %v2690_v35, %s1817_s15  ;;  %1283 = vrot.lane.b32.xlu1 %v1258_v13, %s1816_s21 }
 0x16c   : > { %1456 = vperm.xlu1 %1769, %v1443_v10  }
 0x16e   : > { %v2527_v52 = vpop.permute.xlu0 %1419  ;;  %v2531_v28 = vpop.permute.xlu1 %1424 }
 0x170   : > { %1385 = vrot.lane.b32.xlu1 %v2691_v24, %s1817_s15 }
 0x172   : > { %v2533_v19 = vpop.permute.xlu0 %910  ;;  %v1274_v59 = vpop.permute.xlu1 %1273 }
 0x176   : > { %v2535_v20 = vpop.permute.xlu0 %1279 }
 0x17b   : > { %v2537_v37 = vpop.permute.xlu1 %1446  ;;  %v2539_v12 = vpop.permute.xlu0 %1451 }
 0x17f   : > { %v2541_v34 = vpop.permute.xlu1 %1081  ;;  %v2543_v1 = vpop.permute.xlu0 %1375 }
 0x183   : > { %v2545_v42 = vpop.permute.xlu1 %1381  ;;  %v965_v53 = vpop.permute.xlu0 %964 }
 0x187   : > { %v800_v8 = vpop.permute.xlu0 %799  ;;  %v967_v6 = vpop.permute.xlu1 %966 }
 0x188   : > { %v816_v55 = vsel %vm815_vm10, %v798_v21, %v800_v8  ;;  %v976_v10 = vsel %vm586_vm6, %v965_v53, %v967_v6 }
 0x18b   : > { %v901_v33 = vpop.permute.xlu0 %900  ;;  %v698_v58 = vpop.permute.xlu1 %697 }
 0x18c   : > { %v714_v29 = vsel %vm713_vm4, %v696_v41, %v698_v58  ;;  %v916_v5 = vsel %vm651_vm5, %v899_v61, %v901_v33 }
 0x18d   : > { %v729_v49 = vadd.f32 %v714_v29, %v2692_v51 }
 0x18f   : > { %v831_v18 = vadd.f32 %v816_v55, %v729_v49  ;;  %v1168_v9 = vpop.permute.xlu0 %1167  ;;  %v1066_v60 = vpop.permute.xlu1 %1065 }
 0x191   : > { %v931_v43 = vadd.f32 %v916_v5, %v831_v18 }
 0x193   : > { %v988_v57 = vadd.f32 %v965_v53, %v931_v43  ;;  %v1372_v25 = vpop.permute.xlu0 %1371  ;;  %v1270_v63 = vpop.permute.xlu1 %1269 }
 0x195   : > { %v1099_v0 = vadd.f32 %v1066_v60, %v988_v57 }
 0x197   : > { %v1201_v39 = vadd.f32 %v1168_v9, %v1099_v0  ;;  %v1068_v17 = vpop.permute.xlu0 %1067  ;;  %v700_v15 = vpop.permute.xlu1 %699 }
 0x198   : > { %v715_v41 = vsel %vm713_vm4, %v698_v58, %v700_v15  ;;  %v731_v21 = vadd.f32 %v700_v15, %v2344_v2  ;;  %v1085_v24 = vsel %vm1083_vm11, %v1068_v17, %v2507_v56  ;;  %v1084_v29 = vsel %vm1083_vm11, %v1066_v60, %v1068_v17 }
 0x199   : > { %v1303_v32 = vadd.f32 %v1270_v63, %v1201_v39  ;;  %v730_v45 = vadd.f32 %v715_v41, %v2341_v36  ;;  %v2693_v39 = vld [vmem:[#allocation9_spill] sm:$0xff] }
 0x19b   : > { %v1405_v31 = vadd.f32 %v1372_v25, %v1303_v32  ;;  %v1272_v16 = vpop.permute.xlu0 %1271  ;;  %v802_v38 = vpop.permute.xlu1 %801 }
 0x19c   : > { %v817_v62 = vsel %vm815_vm10, %v800_v8, %v802_v38  ;;  %v833_v61 = vadd.f32 %v802_v38, %v731_v21  ;;  %v1289_v56 = vsel %vm1287_vm13, %v1272_v16, %v1274_v59  ;;  %v1288_v60 = vsel %vm1287_vm13, %v1270_v63, %v1272_v16 }
 0x19d   : > { %v1432_v44 = vmul.f32 %v2527_v52, %v1405_v31  ;;  %v832_v14 = vadd.f32 %v817_v62, %v730_v45 }
 0x19f   : > { %v903_v22 = vpop.permute.xlu1 %902  ;;  %v2556_v27 = vpop.permute.xlu0 %968 }
 0x1a0   : > { %v917_v47 = vsel %vm651_vm5, %v901_v33, %v903_v22  ;;  %v933_v13 = vadd.f32 %v903_v22, %v833_v61 }
 0x1a1   : > { %v932_v35 = vadd.f32 %v917_v47, %v832_v14 }
 0x1a2   : > { %v990_v2 = vadd.f32 %v967_v6, %v933_v13 }
 0x1a3   : > { %v989_v8 = vadd.f32 %v976_v10, %v932_v35  ;;  %v1170_v58 = vpop.permute.xlu1 %1169  ;;  %v704_v36 = vpop.permute.xlu0 %703 }
 0x1a4   : > { %v1101_v51 = vadd.f32 %v1085_v24, %v990_v2  ;;  %v1187_v49 = vsel %vm1185_vm12, %v1170_v58, %v2520_v26  ;;  %v1186_v55 = vsel %vm1185_vm12, %v1168_v9, %v1170_v58  ;;  %v716_v53 = vsel %vm713_vm4, %v2476_v40, %v704_v36 }
 0x1a5   : > { %v1100_v33 = vadd.f32 %v1084_v29, %v989_v8  ;;  %v732_v9 = vadd.f32 %v716_v53, %v2693_v39 }
 0x1a6   : > { %v1203_v18 = vadd.f32 %v1187_v49, %v1101_v51 }
 0x1a7   : > { %v1202_v6 = vadd.f32 %v1186_v55, %v1100_v33  ;;  %v1374_v5 = vpop.permute.xlu1 %1373  ;;  %v806_v43 = vpop.permute.xlu0 %805 }
 0x1a8   : > { %v1305_v57 = vadd.f32 %v1289_v56, %v1203_v18  ;;  %v1391_v0 = vsel %vm1389_vm14, %v1374_v5, %v2543_v1  ;;  %v818_v26 = vsel %vm815_vm10, %v2489_v4, %v806_v43  ;;  %v1390_v15 = vsel %vm1389_vm14, %v1372_v25, %v1374_v5 }
 0x1a9   : > { %v1304_v17 = vadd.f32 %v1288_v60, %v1202_v6  ;;  %v834_v59 = vadd.f32 %v818_v26, %v732_v9 }
 0x1aa   : > { %v1407_v40 = vadd.f32 %v1391_v0, %v1305_v57 }
 0x1ab   : > { %v1406_v32 = vadd.f32 %v1390_v15, %v1304_v17  ;;  %v907_v41 = vpop.permute.xlu0 %906  ;;  %v971_v31 = vpop.permute.xlu1 %970 }
 0x1ac   : > { %v1434_v38 = vmul.f32 %v2527_v52, %v1407_v40  ;;  %v918_v63 = vsel %vm651_vm5, %v2497_v23, %v907_v41 }
 0x1ad   : > { %v1433_v1 = vmul.f32 %v2527_v52, %v1406_v32  ;;  %v934_v16 = vadd.f32 %v918_v63, %v834_v59  ;;  %v1459_v52 = vadd.f32 %v2537_v37, %v1432_v44 }
 0x1ae   : > { %v1461_v4 = vadd.f32 %v2537_v37, %v1434_v38 }
 0x1af   : > { %v1460_v21 = vadd.f32 %v2537_v37, %v1433_v1  ;;  %v991_v62 = vadd.f32 %v2556_v27, %v934_v16  ;;  %v1072_v25 = vpop.permute.xlu0 %1071  ;;  %v1174_v45 = vpop.permute.xlu1 %1173  ;;  %v1468_v33 = vmax.f32 %v1459_v52, 0.0 }
 0x1b0   : > { %v1470_v61 = vmax.f32 %v1461_v4, 0.0 }
 0x1b1   : > { %v1469_v14 = vmax.f32 %v1460_v21, 0.0  ;;  %v1102_v22 = vadd.f32 %v1072_v25, %v991_v62  ;;  %v1477_v60 = vmin.f32 %v1468_v33, 6.0 }
 0x1b2   : > { %v1479_v47 = vmin.f32 %v1470_v61, 6.0 }
 0x1b3   : > { %v1478_v13 = vmin.f32 %v1469_v14, 6.0  ;;  %v1204_v35 = vadd.f32 %v1174_v45, %v1102_v22  ;;  %v1276_v10 = vpop.permute.xlu0 %1275  ;;  %v1378_v2 = vpop.permute.xlu1 %1377 }
 0x1b5   : > { %v1306_v23 = vadd.f32 %v1276_v10, %v1204_v35  ;;  %v1770_v24 = vpack.i.bf16 %v1479_v47, %v1478_v13 }
 0x1b7   : > { %v1408_v8 = vadd.f32 %v1378_v2, %v1306_v23  ;;  %v1176_v58 = vpop.permute.xlu0 %1175  ;;  %v706_v29 = vpop.permute.xlu1 %705  ;;  %1771 = vrot.lane.b32.xlu1 %v1770_v24, %s1812_s28 }
 0x1b8   : > { %v717_v49 = vsel %vm713_vm4, %v704_v36, %v706_v29  ;;  %v734_v56 = vadd.f32 %v706_v29, %v2352_v30  ;;  %v977_v30 = vsel %vm586_vm6, %v2556_v27, %v971_v31  ;;  %v1189_v16 = vsel %vm1185_vm12, %v1176_v58, %v2525_v7 }
 0x1b9   : > { %v1435_v51 = vmul.f32 %v2531_v28, %v1408_v8  ;;  %v733_v37 = vadd.f32 %v717_v49, %v2349_v48 }
 0x1bb   : > { %v1462_v55 = vadd.f32 %v2539_v12, %v1435_v51  ;;  %v1380_v18 = vpop.permute.xlu0 %1379  ;;  %v808_v53 = vpop.permute.xlu1 %807 }
 0x1bc   : > { %v819_v6 = vsel %vm815_vm10, %v806_v43, %v808_v53  ;;  %v836_v44 = vadd.f32 %v808_v53, %v734_v56  ;;  %v1393_v22 = vsel %vm1389_vm14, %v1380_v18, %v2545_v42 }
 0x1bd   : > { %v1471_v5 = vmax.f32 %v1462_v55, 0.0  ;;  %v835_v0 = vadd.f32 %v819_v6, %v733_v37 }
 0x1bf   : > { %v1480_v57 = vmin.f32 %v1471_v5, 6.0  ;;  %v909_v26 = vpop.permute.xlu1 %908  ;;  %v2591_v39 = vpop.permute.xlu0 %974 }
 0x1c0   : > { %v919_v36 = vsel %vm651_vm5, %v907_v41, %v909_v26  ;;  %v936_v9 = vadd.f32 %v909_v26, %v836_v44  ;;  %v1188_v41 = vsel %vm1185_vm12, %v1174_v45, %v1176_v58 }
 0x1c1   : > { %v935_v17 = vadd.f32 %v919_v36, %v835_v0  ;;  %v1775_v15 = vpack.i.bf16 %v1480_v57, %v1477_v60 }
 0x1c2   : > { %v993_v40 = vadd.f32 %v971_v31, %v936_v9 }
 0x1c3   : > { %v992_v43 = vadd.f32 %v977_v30, %v935_v17  ;;  %v1074_v32 = vpop.permute.xlu1 %1073  ;;  %v710_v59 = vpop.permute.xlu0 %709  ;;  %1776 = vrot.lane.b32.xlu1 %v1775_v15, %s1812_s28 }
 0x1c4   : > { %v1086_v48 = vsel %vm1083_vm11, %v1072_v25, %v1074_v32  ;;  %v1087_v38 = vsel %vm1083_vm11, %v1074_v32, %v2511_v11  ;;  %v1392_v11 = vsel %vm1389_vm14, %v1378_v2, %v1380_v18  ;;  %v718_v49 = vsel %vm713_vm4, %v2502_v3, %v710_v59 }
 0x1c5   : > { %v1103_v63 = vadd.f32 %v1086_v48, %v992_v43  ;;  %v1104_v1 = vadd.f32 %v1087_v38, %v993_v40 }
 0x1c7   : > { %v1205_v4 = vadd.f32 %v1188_v41, %v1103_v63  ;;  %v1278_v27 = vpop.permute.xlu1 %1277  ;;  %v1206_v31 = vadd.f32 %v1189_v16, %v1104_v1  ;;  %v913_v21 = vpop.permute.xlu0 %912 }
 0x1c8   : > { %v1290_v62 = vsel %vm1287_vm13, %v1276_v10, %v1278_v27  ;;  %v1291_v61 = vsel %vm1287_vm13, %v1278_v27, %v2535_v20 }
 0x1c9   : > { %v1307_v25 = vadd.f32 %v1290_v62, %v1205_v4  ;;  %v1308_v14 = vadd.f32 %v1291_v61, %v1206_v31 }
 0x1cb   : > { %v1409_v45 = vadd.f32 %v1392_v11, %v1307_v25  ;;  %v1410_v47 = vadd.f32 %v1393_v22, %v1308_v14  ;;  %v973_v13 = vpop.permute.xlu1 %972  ;;  %v814_v7 = vpop.permute.xlu0 %813 }
 0x1cd   : > { %v1436_v35 = vmul.f32 %v2531_v28, %v1409_v45  ;;  %v1437_v23 = vmul.f32 %v2531_v28, %v1410_v47  ;;  %v2694_v28 = vld [vmem:[#allocation4_spill] sm:$0xff] }
 0x1ce   : > { %v735_v18 = vadd.f32 %v718_v49, %v2694_v28  ;;  %v1601_v49 = vld [vmem:[%s2675_s9] sm:$0xf] }
 0x1cf   : > { %v1463_v10 = vadd.f32 %v2539_v12, %v1436_v35  ;;  %v1464_v24 = vadd.f32 %v2539_v12, %v1437_v23  ;;  %v812_v20 = vpop.permute.xlu1 %811  ;;  %v1080_v52 = vpop.permute.xlu0 %1079 }
 0x1d0   : > { %v820_v55 = vsel %vm815_vm10, %v2518_v54, %v812_v20  ;;  %v821_v44 = vsel %vm815_vm10, %v812_v20, %v814_v7  ;;  %v920_v54 = vsel %vm651_vm5, %v2533_v19, %v913_v21 }
 0x1d1   : > { %v1472_v8 = vmax.f32 %v1463_v10, 0.0  ;;  %v1473_v58 = vmax.f32 %v1464_v24, 0.0  ;;  %v837_v5 = vadd.f32 %v820_v55, %v735_v18  ;;  %v1609_v55 = vld [vmem:[%s2676_s10] sm:$0xf] }
 0x1d3   : > { %v1078_v2 = vpop.permute.xlu1 %1077  ;;  %v1180_v29 = vpop.permute.xlu0 %1179  ;;  %v1481_v51 = vmin.f32 %v1472_v8, 6.0  ;;  %v1482_v42 = vmin.f32 %v1473_v58, 6.0  ;;  %v937_v36 = vadd.f32 %v920_v54, %v837_v5 }
 0x1d4   : > { %v1088_v43 = vsel %vm1083_vm11, %v1078_v2, %v1080_v52 }
 0x1d5   : > { %v1780_v33 = vpack.i.bf16 %v1482_v42, %v1481_v51 }
 0x1d7   : > { %1781 = vrot.lane.b32.xlu0 %v1780_v33, %s1812_s28  ;;  %v1184_v12 = vpop.permute.xlu0 %1183  ;;  %v712_v53 = vpop.permute.xlu1 %711 }
 0x1d8   : > { %v719_v56 = vsel %vm713_vm4, %v710_v59, %v712_v53  ;;  %v737_v6 = vadd.f32 %v712_v53, %v2358_v50  ;;  %v978_v50 = vsel %vm586_vm6, %v973_v13, %v2591_v39  ;;  %v994_v59 = vadd.f32 %v973_v13, %v937_v36 }
 0x1d9   : > { %v736_v37 = vadd.f32 %v719_v56, %v2355_v46  ;;  %v1089_v46 = vsel %vm1083_vm11, %v1080_v52, %v2541_v34 }
 0x1da   : > { %v839_v3 = vadd.f32 %v814_v7, %v737_v6  ;;  %v1105_v4 = vadd.f32 %v1078_v2, %v994_v59 }
 0x1db   : > { %v838_v60 = vadd.f32 %v821_v44, %v736_v37  ;;  %v915_v57 = vpop.permute.xlu1 %914  ;;  %v1282_v9 = vpop.permute.xlu0 %1281 }
 0x1dc   : > { %v921_v0 = vsel %vm651_vm5, %v913_v21, %v915_v57  ;;  %v939_v26 = vadd.f32 %v915_v57, %v839_v3  ;;  %v1207_v27 = vadd.f32 %v1180_v29, %v1105_v4  ;;  %v1786_v4 = vld [vmem:[%s1914_s30] sm:$0xff] }
 0x1dd   : > { %v938_v17 = vadd.f32 %v921_v0, %v838_v60 }
 0x1de   : > { %v996_v15 = vadd.f32 %v2591_v39, %v939_v26  ;;  %v1309_v61 = vadd.f32 %v1282_v9, %v1207_v27  ;;  %v2695_v27 = vld [vmem:[#allocation3_spill] sm:$0xff] }
 0x1df   : > { %v995_v30 = vadd.f32 %v978_v50, %v938_v17  ;;  %v1182_v40 = vpop.permute.xlu1 %1181  ;;  %v1286_v1 = vpop.permute.xlu0 %1285 }
 0x1e0   : > { %v1107_v32 = vadd.f32 %v1089_v46, %v996_v15  ;;  %v1191_v19 = vsel %vm1185_vm12, %v1182_v40, %v1184_v12  ;;  %v1190_v38 = vsel %vm1185_vm12, %v1180_v29, %v1182_v40  ;;  %v1486_v15 = vld [vmem:[%s2674_s8] sm:$0xf] }
 0x1e1   : > { %v1106_v48 = vadd.f32 %v1088_v43, %v995_v30 }
 0x1e2   : > { %v1209_v63 = vadd.f32 %v1191_v19, %v1107_v32 }
 0x1e3   : > { %v1208_v41 = vadd.f32 %v1190_v38, %v1106_v48  ;;  %v1430_v16 = vpop.permute.xlu1 %1429  ;;  %v1384_v31 = vpop.permute.xlu0 %1383 }
 0x1e4   : > { %v1411_v25 = vadd.f32 %v1384_v31, %v1309_v61 }
 0x1e6   : > { %v1438_v23 = vmul.f32 %v1430_v16, %v1411_v25 }
 0x1e7   : > { %v1284_v39 = vpop.permute.xlu1 %1283  ;;  %v1388_v14 = vpop.permute.xlu0 %1387 }
 0x1e8   : > { %v1292_v21 = vsel %vm1287_vm13, %v1282_v9, %v1284_v39  ;;  %v1293_v62 = vsel %vm1287_vm13, %v1284_v39, %v1286_v1 }
 0x1e9   : > { %v1310_v11 = vadd.f32 %v1292_v21, %v1208_v41  ;;  %v1311_v22 = vadd.f32 %v1293_v62, %v1209_v63 }
 0x1eb   : > { %v1457_v34 = vpop.permute.xlu1 %1456 }
 0x1ec   : > { %v1465_v20 = vadd.f32 %v1457_v34, %v1438_v23 }
 0x1ee   : > { %v1474_v29 = vmax.f32 %v1465_v20, 0.0 }
 0x1ef   : > { %v1386_v45 = vpop.permute.xlu1 %1385 }
 0x1f0   : > { %v1394_v47 = vsel %vm1389_vm14, %v1384_v31, %v1386_v45  ;;  %v1395_v13 = vsel %vm1389_vm14, %v1386_v45, %v1388_v14  ;;  %v1483_v33 = vmin.f32 %v1474_v29, 6.0 }
 0x1f1   : > { %v1412_v7 = vadd.f32 %v1394_v47, %v1310_v11  ;;  %v1413_v35 = vadd.f32 %v1395_v13, %v1311_v22 }
 0x1f3   : > { %v1439_v10 = vmul.f32 %v1430_v16, %v1412_v7  ;;  %v1440_v24 = vmul.f32 %v1430_v16, %v1413_v35 }
 0x1f5   : > { %v1466_v52 = vadd.f32 %v1457_v34, %v1439_v10  ;;  %v1467_v8 = vadd.f32 %v1457_v34, %v1440_v24 }
 0x1f7   : > { %v1475_v58 = vmax.f32 %v1466_v52, 0.0  ;;  %v1476_v2 = vmax.f32 %v1467_v8, 0.0 }
 0x1f9   : > { %v1484_v51 = vmin.f32 %v1475_v58, 6.0  ;;  %v1485_v42 = vmin.f32 %v1476_v2, 6.0 }
 0x1fb   : > { %1510 = vrot.lane.b32.xlu0 %v1484_v51, %s1812_s28  ;;  %1512 = vrot.lane.b32.xlu1 %v1485_v42, %s1812_s28 }
 0x1ff   : > { %1508 = vrot.lane.b32.xlu0 %v1483_v33, %s1812_s28  ;;  %1604 = vperm.xlu1 %1769, %v1601_v49  }
 0x203   : > { %1612 = vperm.xlu0 %1768, %v1609_v55  }
 0x229   : > { %v1772_v28 = vpop.permute.xlu1 %1771 }
 0x22a   : > { %v1774_v12 = vunpack.i.h.bf16 %v1772_v28  ;;  %v1773_v53 = vunpack.i.l.bf16 %v1772_v28 }
 0x22c   : > { %v1515_v3 = vsel %vm1327_vm2, %v1773_v53, %v1774_v12 }
 0x235   : > { %v1777_v18 = vpop.permute.xlu1 %1776 }
 0x236   : > { %v1778_v56 = vunpack.i.l.bf16 %v1777_v18  ;;  %v1779_v5 = vunpack.i.h.bf16 %v1777_v18 }
 0x238   : > { %v1514_v57 = vsel %vm1327_vm2, %v1778_v56, %v1773_v53 }
 0x249   : > { %v1782_v6 = vpop.permute.xlu0 %1781 }
 0x24a   : > { %v1784_v37 = vunpack.i.h.bf16 %v1782_v6  ;;  %v1783_v44 = vunpack.i.l.bf16 %v1782_v6 }
 0x24c   : > { %v1517_v60 = vsel %vm1327_vm2, %v1783_v44, %v1784_v37  ;;  %v1516_v54 = vsel %vm1327_vm2, %v1779_v5, %v1783_v44 }
 0x24d   : > { %v1710_v0 = vpack.c.bf16 %v1517_v60, %v1515_v3  ;;  %v1712_v26 = vpack.c.bf16 %v1516_v54, %v1514_v57 }
 0x24f   : > { %1711 = vmatprep.subr.bf16.mxu1 %v1710_v0 }
 0x250   : > { %1713 = vmatpush1.bf16.msra.mxu1 %v1712_v26 }
 0x26d   : > { %v1511_v36 = vpop.permute.xlu0 %1510  ;;  %v1513_v9 = vpop.permute.xlu1 %1512 }
 0x26e   : > { %v1519_v17 = vsel %vm1327_vm2, %v1511_v36, %v1513_v9 }
 0x26f   : > { %1534 = vmatprep.subr.mxu1 %v1519_v17 }
 0x271   : > { %v1509_v50 = vpop.permute.xlu0 %1508 }
 0x272   : > { %v1518_v46 = vsel %vm1327_vm2, %v1509_v50, %v1511_v36 }
 0x273   : > { %1535 = vmatpush1.msra.mxu1 %v1518_v46 }
 0x274   : > { %1705 = vmatmul.mubr.msk.f32.vlgmr.msra.gmra.mrb[0].mxu1 %vm1526_vm15, %v1486_v15 }
 0x27e   : > { %v1605_v30 = vpop.permute.xlu1 %1604 }
 0x282   : > { %v1613_v19 = vpop.permute.xlu0 %1612 }
 0x347   : > { %v1596_v40 = vpop.f32.mrb[0].mxu1 }
 0x348   : > { %v1607_v43 = vmul.f32 %v1605_v30, %v1596_v40  ;;  %v1598_v32 = vpop.f32.mrb[1].mxu1 }
 0x349   : > { %v1608_v59 = vmul.f32 %v1605_v30, %v1598_v32 }
 0x34a   : > { %v1615_v48 = vadd.f32 %v1613_v19, %v1607_v43 }
 0x34b   : > { %v1616_v38 = vadd.f32 %v1613_v19, %v1608_v59 }
 0x34c   : > { %v1617_v63 = vmax.f32 %v1615_v48, 0.0 }
 0x34d   : > { %v1618_v1 = vmax.f32 %v1616_v38, 0.0 }
 0x34e   : > { %v1619_v41 = vmin.f32 %v1617_v63, 6.0 }
 0x34f   : > { %v1620_v16 = vmin.f32 %v1618_v1, 6.0 }
 0x350   : > { %v1622_v39 = vadd.f32 %v1786_v4, %v1619_v41 }
 0x351   : > { %v1623_v31 = vadd.f32 %v1620_v16, %v2695_v27 }
 0x353   : > { %v1626_v34 = vcombine.low %v1622_v39, %v1623_v31 }
 0x355   : > { %1628 = vst [vmem:[%s386_s25] sm:$0xff] %v1626_v34 }
 0x356 PF: > { %s21_s17 = sadd.s32 1, %s1793_s17  }
 0x357   : > { %p18_p4 = scmp.ge.s32.totalorder %s21_s17, 4  }
 0x359   :  { %20 = sbr.rel (!%p18_p4) target bundleno = 1 (0x1), region = 101 }

</bundles_post_ra>
